<compile_context>
chip_gen: v7x
topology: tpu7x:2x2x1
jax: 0.10.0
libtpu: 0.0.40
codegen_flags: <defaults>
</compile_context>

<pallas_src>
import math
import numpy as np
import jax
import jax.numpy as jnp
from jax.experimental import pallas as pl
from jax.experimental.pallas import tpu as pltpu

LEAK = 0.2  # nn.LeakyReLU(0.2)


def _leaky(x):
    return jnp.maximum(x, LEAK * x)


def _round_up(x, m):
    return ((x + m - 1) // m) * m


# ------------------------------- Pallas kernel --------------------------------
def _make_generation_kernel(lay):
    """Kernel closed over the static slab layout (all Python ints)."""
    R1, R2, R3, R4, R5, R6, R7 = lay['rows']          # weight-slab row offsets
    P1P, DXP, OUTW, BR = lay['p1p'], lay['dxp'], lay['out_w'], lay['br']
    Y1W = P1P + DXP
    BB = 8                                            # bias band stride (f32 tile rows)

    def kernel(x_ref, w_ref, b_ref, o_ref):
        wdt = w_ref.dtype                             # bf16 in production
        x = x_ref[...]                                # [tm, IN_W], already weight dtype

        def mm(a, w):
            return jnp.dot(a, w, preferred_element_type=jnp.float32)

        # Layer 1: Pz(mean|logvar) fc1 + DecX(mu|ls) fc1 fused into ONE K=IN_W
        # push; heads occupy disjoint, 128-aligned lane ranges of y1.
        y1 = _leaky(mm(x, w_ref[R1:R2, 0:Y1W]) + b_ref[0:1, 0:Y1W])
        t = y1[:, 0:P1P].astype(wdt)                  # Pz hidden   (2H live lanes)
        a1 = y1[:, P1P:Y1W].astype(wdt)               # DecX fc1    (mu|ls fused)

        # Pz layer 2 (both heads) -> live output lanes [0, 2Z)
        y_pz = mm(t, w_ref[R2:R3, 0:OUTW]) + b_ref[BB:BB + 1, 0:OUTW]

        # DecX fc2 (channel-last): mu -> lanes [0,BR), ls -> [BR, 2BR)
        a2 = _leaky(mm(a1, w_ref[R3:R4, 0:2 * BR]) + b_ref[2 * BB:2 * BB + 1, 0:2 * BR])
        m = a2[:, 0:BR].astype(wdt)
        l = a2[:, BR:2 * BR].astype(wdt)

        # ConvTranspose1d stack (kernel==stride) as dense block-diagonal matmuls,
        # one per branch: each is a single 256-wide MXU pass on v6e/v7x.
        m = _leaky(mm(m, w_ref[R4:R5, 0:BR]) + b_ref[3 * BB:3 * BB + 1, 0:BR]).astype(wdt)
        l = _leaky(mm(l, w_ref[R4:R5, BR:2 * BR]) + b_ref[3 * BB:3 * BB + 1, BR:2 * BR]).astype(wdt)
        m = _leaky(mm(m, w_ref[R5:R6, 0:BR]) + b_ref[4 * BB:4 * BB + 1, 0:BR]).astype(wdt)
        l = _leaky(mm(l, w_ref[R5:R6, BR:2 * BR]) + b_ref[4 * BB:4 * BB + 1, BR:2 * BR]).astype(wdt)
        # Last deconv (8->1, output pad-trim folded into the weight):
        # mu -> lanes [2Z, 2Z+n), ls -> [2Z+n, 2Z+2n) of the final slab.
        y_dx = (mm(m, w_ref[R6:R7, 0:OUTW]) + mm(l, w_ref[R6:R7, OUTW:2 * OUTW])
                + b_ref[5 * BB:5 * BB + 1, 0:OUTW])

        # Disjoint live lanes + leaky(0)=tanh(0)=0 -> one full-width unmasked store:
        #   [zmean | zlogvar | xmu | xlogsigma | 0-pad]
        o_ref[...] = _leaky(y_pz) + jnp.tanh(y_dx)

    return kernel


# ---------------------------- pallas_call wrapper ------------------------------
def _row_tiling(m):
    """Row tile and padded row count.

    <=128 rows: one grid step (splitting tiny work across cores only adds
    per-step overhead).  Otherwise: at least 2 'parallel' steps so both v7x
    TensorCores get work, with a 512-row cap so large M amortizes the
    ~0.35us/step pipeline overhead on v5e/v6e too.  Rows round to 16 (bf16
    sublane packing).  VMEM stays a few MB on every generation."""
    m16 = _round_up(m, 16)
    if m16 <= 128:
        tm = m16
    else:
        tm = min(512, _round_up((m16 + 1) // 2, 16))
    return tm, _round_up(m16, tm)


def generation_fused_pallas(x_slab, w_slab, b_slab, lay):
    m, in_w = x_slab.shape
    tm, m_pad = _row_tiling(m)
    if m_pad != m:                       # pad rows: never silently drop trailing rows
        x_slab = jnp.pad(x_slab, ((0, m_pad - m), (0, 0)))
    out_w = lay['out_w']

    out = pl.pallas_call(
        _make_generation_kernel(lay),
        grid=(m_pad // tm,),
        in_specs=[pl.BlockSpec((tm, in_w), lambda i: (i, 0)),
                  pl.BlockSpec(w_slab.shape, lambda i: (0, 0)),   # resident weights
                  pl.BlockSpec(b_slab.shape, lambda i: (0, 0))],  # resident biases
        out_specs=pl.BlockSpec((tm, out_w), lambda i: (i, 0)),
        out_shape=jax.ShapeDtypeStruct((m_pad, out_w), jnp.float32),
        compiler_params=pltpu.CompilerParams(dimension_semantics=("parallel",)),
    )(x_slab, w_slab, b_slab)
    return out[:m]


def generation_net_forward(h, z_post, cate_post, params, cfg):
    B, T, _ = h.shape
    M = B * T
    lay = params['layout']
    # Single lane-dense [M, IN_W] activation slab [h | c | z | 0-pad]: one kernel
    # operand instead of three, bf16 so activation DMA bytes are halved.
    x = jnp.concatenate([h.reshape(M, -1), cate_post.reshape(M, -1),
                         z_post.reshape(M, -1)], axis=-1)
    if x.shape[1] != lay['in_w']:
        x = jnp.pad(x, ((0, 0), (0, lay['in_w'] - x.shape[1])))
    x = x.astype(params['w_slab'].dtype)
    out = generation_fused_pallas(x, params['w_slab'], params['b_slab'], lay)

    zd, n, w = cfg['z_dim'], cfg['n'], cfg['w']
    zmean = out[:, 0:zd].reshape(B, T, zd)
    zlogv = out[:, zd:2 * zd].reshape(B, T, zd)
    # torch concatenates per-t [B,1,1,n,w] tensors along dim 1 -> [B, T, 1, n, w]
    xmu = out[:, 2 * zd:2 * zd + n].reshape(B, T, 1, n, w)
    xls = out[:, 2 * zd + n:2 * zd + 2 * n].reshape(B, T, 1, n, w)
    return zmean, zlogv, xmu, xls


# ----------------------- parameter init / fusion (host glue) -------------------
def _init_linear(key, fan_in, fan_out):
    kw, kb = jax.random.split(key)
    bound = 1.0 / math.sqrt(fan_in)
    w = jax.random.uniform(kw, (fan_in, fan_out), jnp.float32, -bound, bound)
    b = jax.random.uniform(kb, (1, fan_out), jnp.float32, -bound, bound)
    return w, b


def _init_convT(key, c_in, c_out, k):
    kw, kb = jax.random.split(key)
    bound = 1.0 / math.sqrt(c_in * k)
    w = jax.random.uniform(kw, (c_in, c_out, k), jnp.float32, -bound, bound)  # torch [Cin,Cout,K]
    b = jax.random.uniform(kb, (c_out,), jnp.float32, -bound, bound)
    return w, b


def build_fused_params(raw, *, hidden_dim, cate_dim, z_dim, cd, p0, n,
                       weight_dtype=jnp.bfloat16):
    """Pack every GenerationNet parameter into ONE bf16 weight slab and ONE
    banded f32 bias slab (plus the static lane/row layout the kernel needs)."""
    A = lambda x: np.asarray(x, np.float32)
    H, C, Z = hidden_dim, cate_dim, z_dim
    c_ch, L0 = cd
    CDW = c_ch * L0                                     # DecX fc2 width per branch

    (pm1w, pm1b), (pm2w, pm2b) = [(A(w), A(b)) for w, b in raw['pz_mean']]
    (pv1w, pv1b), (pv2w, pv2b) = [(A(w), A(b)) for w, b in raw['pz_logvar']]
    (dm1w, dm1b), (dm2w, dm2b) = [(A(w), A(b)) for w, b in raw['mu_fc']]
    (dl1w, dl1b), (dl2w, dl2b) = [(A(w), A(b)) for w, b in raw['ls_fc']]
    mu_conv = [(A(w), A(b)) for w, b in raw['mu_conv']]
    ls_conv = [(A(w), A(b)) for w, b in raw['ls_conv']]
    E2 = dm1w.shape[1]                                  # enc_dim * 2

    # Per-branch deconv widths (kernel == stride, no inner padding).
    k_a, k_b = mu_conv[0][0].shape[2], mu_conv[1][0].shape[2]
    L1, L2 = L0 * k_a, L0 * k_a * k_b
    flat1 = L1 * mu_conv[0][0].shape[1]                 # after deconv1 (L1 * 16)
    flat2 = L2 * mu_conv[1][0].shape[1]                 # after deconv2 (L2 * 8)

    # ---- lane / row layout (every boundary (16,128)-tile aligned) ----
    in_w = _round_up(H + C + Z, 64)                     # [h|c|z] input slab width
    P1P = _round_up(2 * H, 128)                         # fused Pz fc1 lane budget
    DXP = _round_up(2 * E2, 128)                        # fused DecX fc1 lane budget
    out_w = _round_up(2 * Z + 2 * n, 128)               # packed output width
    BR = _round_up(max(CDW, flat1, flat2), 128)         # per-branch deconv lane budget
    SW = max(P1P + DXP, 2 * BR, 2 * out_w)              # slab lane width

    R1 = 0                        # layer-1 rows
    R2 = R1 + in_w                # Pz layer-2 rows
    R3 = R2 + P1P                 # DecX fc2 rows
    R4 = R3 + DXP                 # deconv1 rows
    R5 = R4 + BR                  # deconv2 rows
    R6 = R5 + BR                  # deconv3 rows
    R7 = R6 + BR

    Wslab = np.zeros((R7, SW), np.float32)
    Bslab = np.zeros((6 * 8, SW), np.float32)           # one 8-row band per bias

    # ---- layer 1: the four fc1 heads share one [in_w, P1P+DXP] weight ----
    # input rows: h -> [0,H), c -> [H,H+C), z -> [H+C, H+C+Z); zero elsewhere.
    Wslab[R1:R1 + H, 0:H] = pm1w[:H]
    Wslab[R1:R1 + H, H:2 * H] = pv1w[:H]
    Wslab[R1 + H:R1 + H + C, 0:H] = pm1w[H:H + C]
    Wslab[R1 + H:R1 + H + C, H:2 * H] = pv1w[H:H + C]
    Wslab[R1:R1 + H, P1P:P1P + E2] = dm1w[:H]
    Wslab[R1:R1 + H, P1P + E2:P1P + 2 * E2] = dl1w[:H]
    Wslab[R1 + H + C:R1 + H + C + Z, P1P:P1P + E2] = dm1w[H:H + Z]
    Wslab[R1 + H + C:R1 + H + C + Z, P1P + E2:P1P + 2 * E2] = dl1w[H:H + Z]
    Bslab[0, 0:H] = pm1b[0]
    Bslab[0, H:2 * H] = pv1b[0]
    Bslab[0, P1P:P1P + E2] = dm1b[0]
    Bslab[0, P1P + E2:P1P + 2 * E2] = dl1b[0]

    # ---- Pz layer 2: mean | logvar heads, live output lanes [0, 2Z) ----
    Wslab[R2:R2 + H, 0:Z] = pm2w
    Wslab[R2 + H:R2 + 2 * H, Z:2 * Z] = pv2w
    Bslab[8, 0:Z] = pm2b[0]
    Bslab[8, Z:2 * Z] = pv2b[0]

    # ---- DecX fc2 (torch [C,L] view -> channel-last [L,C] permutation) ----
    perm = np.arange(c_ch * L0).reshape(c_ch, L0).T.reshape(-1)
    Wslab[R3:R3 + E2, 0:CDW] = dm2w[:, perm]
    Wslab[R3 + E2:R3 + 2 * E2, BR:BR + CDW] = dl2w[:, perm]
    Bslab[16, 0:CDW] = dm2b[0, perm]
    Bslab[16, BR:BR + CDW] = dl2b[0, perm]

    # ---- ConvTranspose1d (kernel==stride, pad 0) == block-diagonal matmul ----
    # Full dense fix (L on the sublane axis) left out: the XLU relayouts it
    # needs outweigh the zero-MAC savings at L <= 20.
    def convT_blockdiag(w, b, L):
        c_in, c_out, k = w.shape
        w_loc = np.transpose(w, (0, 2, 1)).reshape(c_in, k * c_out)
        big = np.zeros((L * c_in, L * k * c_out), np.float32)
        for l_ in range(L):
            big[l_ * c_in:(l_ + 1) * c_in, l_ * k * c_out:(l_ + 1) * k * c_out] = w_loc
        return big, np.tile(np.tile(b, k), L)

    for br, (conv, col0) in enumerate(((mu_conv, 0), (ls_conv, BR))):
        wd1, bd1 = convT_blockdiag(*conv[0], L0)        # 32 -> 16
        wd2, bd2 = convT_blockdiag(*conv[1], L1)        # 16 -> 8
        wd3, bd3 = convT_blockdiag(*conv[2], L2)        # 8  -> 1
        if p0:                                          # fold output pad-trim into weight
            wd3, bd3 = wd3[:, p0:-p0], bd3[p0:-p0]
        assert wd3.shape[1] == n
        Wslab[R4:R4 + CDW, col0:col0 + flat1] = wd1
        Wslab[R5:R5 + flat1, col0:col0 + flat2] = wd2
        Bslab[24, col0:col0 + flat1] = bd1
        Bslab[32, col0:col0 + flat2] = bd2
        lane0 = 2 * Z + br * n                          # mu -> [2Z,2Z+n), ls -> [2Z+n,2Z+2n)
        Wslab[R6:R6 + flat2, br * out_w + lane0:br * out_w + lane0 + n] = wd3
        Bslab[40, lane0:lane0 + n] = bd3

    # The packed-output trick relies on these lanes staying exactly zero
    # (leaky(0) = tanh(0) = 0 makes the final add exact).
    assert np.all(Wslab[R2:R3, 2 * Z:] == 0.0) and np.all(Bslab[8, 2 * Z:] == 0.0)
    assert np.all(Wslab[R6:R7, 0:2 * Z] == 0.0)
    assert np.all(Wslab[R6:R7, 2 * Z + n:out_w] == 0.0)
    assert np.all(Wslab[R6:R7, out_w:out_w + 2 * Z + n] == 0.0)
    assert np.all(Wslab[R6:R7, out_w + 2 * Z + 2 * n:] == 0.0)
    assert np.all(Bslab[40, 0:2 * Z] == 0.0) and np.all(Bslab[40, 2 * Z + 2 * n:] == 0.0)

    return {
        'w_slab': jnp.asarray(Wslab, weight_dtype),     # MXU operands (bf16)
        'b_slab': jnp.asarray(Bslab, jnp.float32),      # added after f32 accumulation
        'layout': dict(in_w=in_w, p1p=P1P, dxp=DXP, out_w=out_w, br=BR,
                       rows=(R1, R2, R3, R4, R5, R6, R7)),
    }


# --------------------- pure-JAX f32 reference (sanity check) -------------------
def reference_forward(h, z_post, cate_post, raw, cd, n):
    B, T, _ = h.shape
    z_dim = z_post.shape[-1]
    hc = jnp.concatenate([h, cate_post], axis=-1).reshape(B * T, -1)
    hz = jnp.concatenate([h, z_post], axis=-1).reshape(B * T, -1)

    def mlp2(x, p):
        (w1, b1), (w2, b2) = p
        return _leaky(_leaky(x @ w1 + b1) @ w2 + b2)

    def convT(x, w, b, pad):
        M_, ci, L = x.shape
        _, co, k = w.shape
        y = jnp.einsum('mil,ioj->molj', x, w).reshape(M_, co, L * k) + b[None, :, None]
        if pad:
            y = y[:, :, pad:-pad]
        return y

    def decx_branch(x, fcs, convs):
        a = mlp2(x, fcs)
        a = a.reshape(-1, cd[0], cd[1])          # [M, C=32, L=s_d]
        (c1w, c1b), (c2w, c2b), (c3w, c3b) = convs
        a = _leaky(convT(a, c1w, c1b, 0))
        a = _leaky(convT(a, c2w, c2b, 0))
        a = jnp.tanh(convT(a, c3w, c3b, 1))
        return a

    zmean = mlp2(hc, raw['pz_mean']).reshape(B, T, z_dim)
    zlogv = mlp2(hc, raw['pz_logvar']).reshape(B, T, z_dim)
    xmu = decx_branch(hz, raw['mu_fc'], raw['mu_conv']).reshape(B, T, 1, n, 1)
    xls = decx_branch(hz, raw['ls_fc'], raw['ls_conv']).reshape(B, T, 1, n, 1)
    return zmean, zlogv, xmu, xls


# ------------------------------------ main -------------------------------------
if __name__ == "__main__":
    B, T = 2, 8
    hidden_dim, cate_dim, z_dim, enc_dim = 32, 4, 16, 32
    n, w = 38, 1
    dec_init_dim = hidden_dim + z_dim            # GenerationNet feeds concat(h, z) to DecX
    k0 = k1 = k2 = 2
    p0 = 1
    s_d = (n + k0 * p0) // (k0 * k1 * k2)        # 5
    cd = [32, s_d]

    keys = iter(jax.random.split(jax.random.PRNGKey(0), 32))

    pz_mean = (_init_linear(next(keys), hidden_dim + cate_dim, hidden_dim),
               _init_linear(next(keys), hidden_dim, z_dim))
    pz_logvar = (_init_linear(next(keys), hidden_dim + cate_dim, hidden_dim),
                 _init_linear(next(keys), hidden_dim, z_dim))

    def build_decx_branch():
        fc = (_init_linear(next(keys), dec_init_dim, enc_dim * 2),
              _init_linear(next(keys), enc_dim * 2, cd[0] * cd[1]))
        conv = (_init_convT(next(keys), 32, 16, k2),
                _init_convT(next(keys), 16, 8, k1),
                _init_convT(next(keys), 8, 1, k0))
        return fc, conv

    mu_fc, mu_conv = build_decx_branch()
    ls_fc, ls_conv = build_decx_branch()

    raw = {'pz_mean': pz_mean, 'pz_logvar': pz_logvar,
           'mu_fc': mu_fc, 'mu_conv': mu_conv,
           'ls_fc': ls_fc, 'ls_conv': ls_conv}

    params = build_fused_params(raw, hidden_dim=hidden_dim, cate_dim=cate_dim,
                                z_dim=z_dim, cd=cd, p0=p0, n=n,
                                weight_dtype=jnp.bfloat16)

    kh, kz, kc = jax.random.split(next(keys), 3)
    h = jax.random.normal(kh, (B, T, hidden_dim), jnp.float32)
    z_posterior = jax.random.normal(kz, (B, T, z_dim), jnp.float32)
    cate_posterior = jax.nn.softmax(
        jax.random.normal(kc, (B, T, cate_dim), jnp.float32), axis=-1)

    cfg = dict(z_dim=z_dim, n=n, w=w)
    out = generation_net_forward(h, z_posterior, cate_posterior, params, cfg)
    out = jax.block_until_ready(out)

    # Tolerance is the deliberate bf16-weight/activation error budget vs the f32
    # reference (pass weight_dtype=jnp.float32 above for a tighter all-f32 check).
    ref = reference_forward(h, z_posterior, cate_posterior, raw, cd, n)
    for got, want in zip(out, ref):
        assert got.shape == want.shape, (got.shape, want.shape)
        np.testing.assert_allclose(np.asarray(got), np.asarray(want),
                                   rtol=3e-2, atol=3e-2)

    print("KERNEL_OK")
</pallas_src>

<mosaic_0001>
module attributes {stable_mosaic.version = 11 : i64} {
  func.func @kernel(%arg0: i32, %arg1: memref<16x64xbf16, #tpu.memory_space<vmem>>, %arg2: memref<1088x512xbf16, #tpu.memory_space<vmem>>, %arg3: memref<48x512xf32, #tpu.memory_space<vmem>>, %arg4: memref<16x128xf32, #tpu.memory_space<vmem>>) attributes {dimension_semantics = [#tpu.dimension_semantics<parallel>], iteration_bounds = array<i64: 1>, scalar_prefetch = 0 : i64, scratch_operands = 0 : i64, tpu.core_type = #tpu.core_type<tc>, window_params = [{transform_indices = @transform_0, window_bounds = array<i64: 16, 64>}, {pipeline_mode = #tpu.pipeline_mode<synchronous>, transform_indices = @transform_1, window_bounds = array<i64: 1088, 512>}, {pipeline_mode = #tpu.pipeline_mode<synchronous>, transform_indices = @transform_2, window_bounds = array<i64: 48, 512>}, {transform_indices = @transform_3, window_bounds = array<i64: 16, 128>}]} {
    %c0 = arith.constant 0 : index
    %c0_0 = arith.constant 0 : index
    %0 = vector.load %arg1[%c0, %c0_0] : memref<16x64xbf16, #tpu.memory_space<vmem>>, vector<16x64xbf16>
    %c0_1 = arith.constant 0 : index
    %c0_2 = arith.constant 0 : index
    %1 = vector.load %arg2[%c0_1, %c0_2] : memref<1088x512xbf16, #tpu.memory_space<vmem>>, vector<64x256xbf16>
    %cst = arith.constant dense<0.000000e+00> : vector<16x256xf32>
    %2 = tpu.matmul %0, %1, %cst {dimension_numbers = #tpu.dot_dimension_numbers<[1], [0], [0], [1], [0, 0, 1, 1], [], []>} : vector<16x64xbf16>, vector<64x256xbf16>, vector<16x256xf32> -> vector<16x256xf32>
    %c0_3 = arith.constant 0 : index
    %c0_4 = arith.constant 0 : index
    %3 = vector.load %arg3[%c0_3, %c0_4] : memref<48x512xf32, #tpu.memory_space<vmem>>, vector<1x256xf32>
    %4 = vector.broadcast %3 : vector<1x256xf32> to vector<16x256xf32>
    %5 = arith.addf %2, %4 : vector<16x256xf32>
    %cst_5 = arith.constant 2.000000e-01 : f32
    %6 = vector.broadcast %cst_5 : f32 to vector<16x256xf32>
    %7 = arith.mulf %6, %5 : vector<16x256xf32>
    %8 = arith.maximumf %5, %7 : vector<16x256xf32>
    %9 = vector.extract_strided_slice %8 {offsets = [0, 0], sizes = [16, 128], strides = [1, 1]} : vector<16x256xf32> to vector<16x128xf32>
    %10 = arith.truncf %9 : vector<16x128xf32> to vector<16x128xbf16>
    %11 = vector.extract_strided_slice %8 {offsets = [0, 128], sizes = [16, 128], strides = [1, 1]} : vector<16x256xf32> to vector<16x128xf32>
    %12 = arith.truncf %11 : vector<16x128xf32> to vector<16x128xbf16>
    %c64 = arith.constant 64 : index
    %c0_6 = arith.constant 0 : index
    %13 = vector.load %arg2[%c64, %c0_6] : memref<1088x512xbf16, #tpu.memory_space<vmem>>, vector<128x128xbf16>
    %cst_7 = arith.constant dense<0.000000e+00> : vector<16x128xf32>
    %14 = tpu.matmul %10, %13, %cst_7 {dimension_numbers = #tpu.dot_dimension_numbers<[1], [0], [0], [1], [0, 0, 1, 1], [], []>} : vector<16x128xbf16>, vector<128x128xbf16>, vector<16x128xf32> -> vector<16x128xf32>
    %c8 = arith.constant 8 : index
    %c0_8 = arith.constant 0 : index
    %15 = vector.load %arg3[%c8, %c0_8] : memref<48x512xf32, #tpu.memory_space<vmem>>, vector<1x128xf32>
    %16 = vector.broadcast %15 : vector<1x128xf32> to vector<16x128xf32>
    %17 = arith.addf %14, %16 : vector<16x128xf32>
    %c192 = arith.constant 192 : index
    %c0_9 = arith.constant 0 : index
    %18 = vector.load %arg2[%c192, %c0_9] : memref<1088x512xbf16, #tpu.memory_space<vmem>>, vector<128x512xbf16>
    %cst_10 = arith.constant dense<0.000000e+00> : vector<16x512xf32>
    %19 = tpu.matmul %12, %18, %cst_10 {dimension_numbers = #tpu.dot_dimension_numbers<[1], [0], [0], [1], [0, 0, 1, 1], [], []>} : vector<16x128xbf16>, vector<128x512xbf16>, vector<16x512xf32> -> vector<16x512xf32>
    %c16 = arith.constant 16 : index
    %c0_11 = arith.constant 0 : index
    %20 = vector.load %arg3[%c16, %c0_11] : memref<48x512xf32, #tpu.memory_space<vmem>>, vector<1x512xf32>
    %21 = vector.broadcast %20 : vector<1x512xf32> to vector<16x512xf32>
    %22 = arith.addf %19, %21 : vector<16x512xf32>
    %cst_12 = arith.constant 2.000000e-01 : f32
    %23 = vector.broadcast %cst_12 : f32 to vector<16x512xf32>
    %24 = arith.mulf %23, %22 : vector<16x512xf32>
    %25 = arith.maximumf %22, %24 : vector<16x512xf32>
    %26 = vector.extract_strided_slice %25 {offsets = [0, 0], sizes = [16, 256], strides = [1, 1]} : vector<16x512xf32> to vector<16x256xf32>
    %27 = arith.truncf %26 : vector<16x256xf32> to vector<16x256xbf16>
    %28 = vector.extract_strided_slice %25 {offsets = [0, 256], sizes = [16, 256], strides = [1, 1]} : vector<16x512xf32> to vector<16x256xf32>
    %29 = arith.truncf %28 : vector<16x256xf32> to vector<16x256xbf16>
    %c320 = arith.constant 320 : index
    %c0_13 = arith.constant 0 : index
    %30 = vector.load %arg2[%c320, %c0_13] : memref<1088x512xbf16, #tpu.memory_space<vmem>>, vector<256x256xbf16>
    %cst_14 = arith.constant dense<0.000000e+00> : vector<16x256xf32>
    %31 = tpu.matmul %27, %30, %cst_14 {dimension_numbers = #tpu.dot_dimension_numbers<[1], [0], [0], [1], [0, 0, 1, 1], [], []>} : vector<16x256xbf16>, vector<256x256xbf16>, vector<16x256xf32> -> vector<16x256xf32>
    %c24 = arith.constant 24 : index
    %c0_15 = arith.constant 0 : index
    %32 = vector.load %arg3[%c24, %c0_15] : memref<48x512xf32, #tpu.memory_space<vmem>>, vector<1x256xf32>
    %33 = vector.broadcast %32 : vector<1x256xf32> to vector<16x256xf32>
    %34 = arith.addf %31, %33 : vector<16x256xf32>
    %cst_16 = arith.constant 2.000000e-01 : f32
    %35 = vector.broadcast %cst_16 : f32 to vector<16x256xf32>
    %36 = arith.mulf %35, %34 : vector<16x256xf32>
    %37 = arith.maximumf %34, %36 : vector<16x256xf32>
    %38 = arith.truncf %37 : vector<16x256xf32> to vector<16x256xbf16>
    %c320_17 = arith.constant 320 : index
    %c256 = arith.constant 256 : index
    %39 = vector.load %arg2[%c320_17, %c256] : memref<1088x512xbf16, #tpu.memory_space<vmem>>, vector<256x256xbf16>
    %cst_18 = arith.constant dense<0.000000e+00> : vector<16x256xf32>
    %40 = tpu.matmul %29, %39, %cst_18 {dimension_numbers = #tpu.dot_dimension_numbers<[1], [0], [0], [1], [0, 0, 1, 1], [], []>} : vector<16x256xbf16>, vector<256x256xbf16>, vector<16x256xf32> -> vector<16x256xf32>
    %c24_19 = arith.constant 24 : index
    %c256_20 = arith.constant 256 : index
    %41 = vector.load %arg3[%c24_19, %c256_20] : memref<48x512xf32, #tpu.memory_space<vmem>>, vector<1x256xf32>
    %42 = vector.broadcast %41 : vector<1x256xf32> to vector<16x256xf32>
    %43 = arith.addf %40, %42 : vector<16x256xf32>
    %cst_21 = arith.constant 2.000000e-01 : f32
    %44 = vector.broadcast %cst_21 : f32 to vector<16x256xf32>
    %45 = arith.mulf %44, %43 : vector<16x256xf32>
    %46 = arith.maximumf %43, %45 : vector<16x256xf32>
    %47 = arith.truncf %46 : vector<16x256xf32> to vector<16x256xbf16>
    %c576 = arith.constant 576 : index
    %c0_22 = arith.constant 0 : index
    %48 = vector.load %arg2[%c576, %c0_22] : memref<1088x512xbf16, #tpu.memory_space<vmem>>, vector<256x256xbf16>
    %cst_23 = arith.constant dense<0.000000e+00> : vector<16x256xf32>
    %49 = tpu.matmul %38, %48, %cst_23 {dimension_numbers = #tpu.dot_dimension_numbers<[1], [0], [0], [1], [0, 0, 1, 1], [], []>} : vector<16x256xbf16>, vector<256x256xbf16>, vector<16x256xf32> -> vector<16x256xf32>
    %c32 = arith.constant 32 : index
    %c0_24 = arith.constant 0 : index
    %50 = vector.load %arg3[%c32, %c0_24] : memref<48x512xf32, #tpu.memory_space<vmem>>, vector<1x256xf32>
    %51 = vector.broadcast %50 : vector<1x256xf32> to vector<16x256xf32>
    %52 = arith.addf %49, %51 : vector<16x256xf32>
    %cst_25 = arith.constant 2.000000e-01 : f32
    %53 = vector.broadcast %cst_25 : f32 to vector<16x256xf32>
    %54 = arith.mulf %53, %52 : vector<16x256xf32>
    %55 = arith.maximumf %52, %54 : vector<16x256xf32>
    %56 = arith.truncf %55 : vector<16x256xf32> to vector<16x256xbf16>
    %c576_26 = arith.constant 576 : index
    %c256_27 = arith.constant 256 : index
    %57 = vector.load %arg2[%c576_26, %c256_27] : memref<1088x512xbf16, #tpu.memory_space<vmem>>, vector<256x256xbf16>
    %cst_28 = arith.constant dense<0.000000e+00> : vector<16x256xf32>
    %58 = tpu.matmul %47, %57, %cst_28 {dimension_numbers = #tpu.dot_dimension_numbers<[1], [0], [0], [1], [0, 0, 1, 1], [], []>} : vector<16x256xbf16>, vector<256x256xbf16>, vector<16x256xf32> -> vector<16x256xf32>
    %c32_29 = arith.constant 32 : index
    %c256_30 = arith.constant 256 : index
    %59 = vector.load %arg3[%c32_29, %c256_30] : memref<48x512xf32, #tpu.memory_space<vmem>>, vector<1x256xf32>
    %60 = vector.broadcast %59 : vector<1x256xf32> to vector<16x256xf32>
    %61 = arith.addf %58, %60 : vector<16x256xf32>
    %cst_31 = arith.constant 2.000000e-01 : f32
    %62 = vector.broadcast %cst_31 : f32 to vector<16x256xf32>
    %63 = arith.mulf %62, %61 : vector<16x256xf32>
    %64 = arith.maximumf %61, %63 : vector<16x256xf32>
    %65 = arith.truncf %64 : vector<16x256xf32> to vector<16x256xbf16>
    %c832 = arith.constant 832 : index
    %c0_32 = arith.constant 0 : index
    %66 = vector.load %arg2[%c832, %c0_32] : memref<1088x512xbf16, #tpu.memory_space<vmem>>, vector<256x128xbf16>
    %cst_33 = arith.constant dense<0.000000e+00> : vector<16x128xf32>
    %67 = tpu.matmul %56, %66, %cst_33 {dimension_numbers = #tpu.dot_dimension_numbers<[1], [0], [0], [1], [0, 0, 1, 1], [], []>} : vector<16x256xbf16>, vector<256x128xbf16>, vector<16x128xf32> -> vector<16x128xf32>
    %c832_34 = arith.constant 832 : index
    %c128 = arith.constant 128 : index
    %68 = vector.load %arg2[%c832_34, %c128] : memref<1088x512xbf16, #tpu.memory_space<vmem>>, vector<256x128xbf16>
    %cst_35 = arith.constant dense<0.000000e+00> : vector<16x128xf32>
    %69 = tpu.matmul %65, %68, %cst_35 {dimension_numbers = #tpu.dot_dimension_numbers<[1], [0], [0], [1], [0, 0, 1, 1], [], []>} : vector<16x256xbf16>, vector<256x128xbf16>, vector<16x128xf32> -> vector<16x128xf32>
    %70 = arith.addf %67, %69 : vector<16x128xf32>
    %c40 = arith.constant 40 : index
    %c0_36 = arith.constant 0 : index
    %71 = vector.load %arg3[%c40, %c0_36] : memref<48x512xf32, #tpu.memory_space<vmem>>, vector<1x128xf32>
    %72 = vector.broadcast %71 : vector<1x128xf32> to vector<16x128xf32>
    %73 = arith.addf %70, %72 : vector<16x128xf32>
    %cst_37 = arith.constant 2.000000e-01 : f32
    %74 = vector.broadcast %cst_37 : f32 to vector<16x128xf32>
    %75 = arith.mulf %74, %17 : vector<16x128xf32>
    %76 = arith.maximumf %17, %75 : vector<16x128xf32>
    %77 = math.tanh %73 : vector<16x128xf32>
    %78 = arith.addf %76, %77 : vector<16x128xf32>
    %c0_38 = arith.constant 0 : index
    %c0_39 = arith.constant 0 : index
    %79 = vector.load %arg4[%c0_38, %c0_39] : memref<16x128xf32, #tpu.memory_space<vmem>>, vector<16x128xf32>
    tpu.vector_store %arg4[%c0_38, %c0_39], %78 {strides = array<i32>} : memref<16x128xf32, #tpu.memory_space<vmem>>, vector<16x128xf32>,
    return
  }
  func.func @transform_0(%arg0: i32) -> (i32, i32) {
    %c0_i32 = arith.constant 0 : i32
    %c0_i32_0 = arith.constant 0 : i32
    return %arg0, %c0_i32 : i32, i32
  }
  func.func @transform_1(%arg0: i32) -> (i32, i32) {
    %c0_i32 = arith.constant 0 : i32
    %c0_i32_0 = arith.constant 0 : i32
    %c0_i32_1 = arith.constant 0 : i32
    return %c0_i32, %c0_i32_0 : i32, i32
  }
  func.func @transform_2(%arg0: i32) -> (i32, i32) {
    %c0_i32 = arith.constant 0 : i32
    %c0_i32_0 = arith.constant 0 : i32
    %c0_i32_1 = arith.constant 0 : i32
    return %c0_i32, %c0_i32_0 : i32, i32
  }
  func.func @transform_3(%arg0: i32) -> (i32, i32) {
    %c0_i32 = arith.constant 0 : i32
    %c0_i32_0 = arith.constant 0 : i32
    return %arg0, %c0_i32 : i32, i32
  }
}

</mosaic_0001>

<bundles_post_ra>
// kernel: tpu_custom_call.1
= control target key start
LH: loop header
LB: loop body
LE: loop exit
PB: predicated region body
PF: predicated region fallthrough
CT: control target
= control target key end

     0   :  { %8 = vsyncpa [#allocation3], 0  ;;  %s2825_s0 = inlined_call_operand.hbm [shape: bf16[16,64], index: 0, kind: input, shape index: {}]   ;;  %s2826_s1 = inlined_call_operand.hbm [shape: bf16[1088,512], index: 1, kind: input, shape index: {}]   ;;  %s2827_s2 = inlined_call_operand.hbm [shape: f32[48,512], index: 2, kind: input, shape index: {}]   ;;  %s2828_s3 = inlined_call_operand.hbm [shape: f32[16,128], index: 3, kind: output, shape index: {}]  }
   0x1   :  { %9 = vsyncpa [#allocation6], 0 }
   0x2   :  { %10 = vsyncpa [#allocation4], 0  ;;  %s2698_s12 = smov [#allocation5]   ;;  %s2604_s16 = scalar_lea.hbm %s2826_s1, 34816 }
   0x3   :  { %s28_s13 = sshll.u32 %s2698_s12, 4  ;;  %p2605_p0 = scmp.ne.s32.totalorder %s2826_s1, %s2604_s16  ;;  %s29_s13 = int_to_ptr.vmem [resolvable:$true] %s28_s13 }
   0x4   :  { %p2608_p1 = scmp.lt.u32.totalorder %s2604_s16, %s2826_s1 }
   0x6   :  { %p2610_p2 = pnand %p2608_p1, %p2605_p0 }
   0x8   :  { %2613 = shalt.err (!%p2610_p2)
}
   0x9   :  { %s2614_s21 = scalar_lea.vmem %s29_s13, 34816  ;;  %p2619_p4 = scmp.lt.s32.totalorder %s29_s13, %s29_s13 }
   0xa   :  { %p2615_p3 = scmp.ne.s32.totalorder %s29_s13, %s2614_s21  ;;  %p2620_p5 = scmp.lt.s32.totalorder %s2614_s21, %s2614_s21 }
   0xc   :  { %p2621_p6 = por %p2620_p5, %p2619_p4 }
   0xe   :  { %p2622_p7 = pnand %p2621_p6, %p2615_p3 }
  0x10   :  { %2625 = shalt.err (!%p2622_p7)
}
  0x11   :  { %s2699_s22 = smov 256   ;;  %s2700_s23 = smov 16  }
  0x12   :  { %34 = dma.hbm_to_vmem [thread:$0]  %s2826_s1, 34816, %s29_s13, [#allocation6], %s2699_s22, %s2699_s22, %s2700_s23  }
  0x13   :  { %s2701_s26 = smov [#allocation2]   ;;  %s2626_s30 = scalar_lea.hbm %s2825_s0, 128 }
  0x14   :  { %s16_s27 = sshll.u32 %s2701_s26, 4  ;;  %p2627_p8 = scmp.ne.s32.totalorder %s2825_s0, %s2626_s30  ;;  %s17_s27 = int_to_ptr.vmem [resolvable:$true] %s16_s27 }
  0x15   :  { %p2630_p9 = scmp.lt.u32.totalorder %s2626_s30, %s2825_s0 }
  0x17   :  { %p2632_p10 = pnand %p2630_p9, %p2627_p8 }
  0x19   :  { %2635 = shalt.err (!%p2632_p10)
}
  0x1a   :  { %s2636_s8 = scalar_lea.vmem %s17_s27, 128  ;;  %p2641_p12 = scmp.lt.s32.totalorder %s17_s27, %s17_s27 }
  0x1b   :  { %p2637_p11 = scmp.ne.s32.totalorder %s17_s27, %s2636_s8  ;;  %p2642_p13 = scmp.lt.s32.totalorder %s2636_s8, %s2636_s8 }
  0x1d   :  { %p2643_p0 = por %p2642_p13, %p2641_p12 }
  0x1f   :  { %p2644_p1 = pnand %p2643_p0, %p2637_p11 }
  0x21   :  { %2647 = shalt.err (!%p2644_p1)
}
  0x22   :  { %s2702_s1 = smov 64   ;;  %s2703_s9 = smov 4  }
  0x23   :  { %22 = dma.hbm_to_vmem [thread:$0]  %s2825_s0, 128, %s17_s27, [#allocation3], %s2702_s1, %s2702_s1, %s2703_s9  }
  0x24   :  { %s2704_s12 = smov [#allocation7]   ;;  %s2648_s16 = scalar_lea.hbm %s2827_s2, 3072 }
  0x25   :  { %s40_s13 = sshll.u32 %s2704_s12, 4  ;;  %p2649_p2 = scmp.ne.s32.totalorder %s2827_s2, %s2648_s16  ;;  %s41_s13 = int_to_ptr.vmem [resolvable:$true] %s40_s13 }
  0x26   :  { %p2652_p3 = scmp.lt.u32.totalorder %s2648_s16, %s2827_s2 }
  0x28   :  { %p2654_p4 = pnand %p2652_p3, %p2649_p2 }
  0x2a   :  { %2657 = shalt.err (!%p2654_p4)
}
  0x2b   :  { %s2658_s21 = scalar_lea.vmem %s41_s13, 3072  ;;  %p2663_p6 = scmp.lt.s32.totalorder %s41_s13, %s41_s13 }
  0x2c   :  { %p2659_p5 = scmp.ne.s32.totalorder %s41_s13, %s2658_s21  ;;  %p2664_p7 = scmp.lt.s32.totalorder %s2658_s21, %s2658_s21 }
  0x2e   :  { %p2665_p8 = por %p2664_p7, %p2663_p6 }
  0x30   :  { %p2666_p9 = pnand %p2665_p8, %p2659_p5 }
  0x32   :  { %2669 = shalt.err (!%p2666_p9)
}
  0x33   :  { %s2705_s0 = smov 512   ;;  %s2706_s22 = smov 32  }
  0x34   :  { %46 = dma.hbm_to_vmem [thread:$0]  %s2827_s2, 3072, %s41_s13, [#allocation6], %s2705_s0, %s2705_s0, %s2706_s22  }
  0x35   :  { %2692 = dma.done.wait [#allocation3], 128  }
  0x36   :  { %2693 = vsyncadd [#allocation3], 4294967168 }
  0x37   :  { %2694 = dma.done.wait [#allocation6], 37888  }
  0x38   :  { %2695 = vsyncadd [#allocation6], 4294929408  ;;  %v2707_v0 = vmov 0   ;;  %v2708_v1 = vmov 0.0   ;;  %v2307_v2 = vld [vmem:[#allocation5 + $0x4] ss:$16 sps:$4 sm:$0xff]   ;;  %v69_v37 = vlaneseq }
  0x39   :  { %160 = vmatprep.mubr.bf16.mxu0 %v2707_v0  ;;  %2272 = vmatprep.subr.bf16.mxu1 %v2708_v1  ;;  %v2309_v3 = vld [vmem:[#allocation5] ss:$16 sps:$4 sm:$0xff]   ;;  %v2310_v4 = vld [vmem:[#allocation5 + $0x24] ss:$16 sps:$4 sm:$0xff]   ;;  %v2319_v14 = vld [vmem:[#allocation2] sm:$0xff]   ;;  %vm124_vm0 = vcmask 523264  }
  0x3a   :  { %128 = vmatprep.subr.bf16.mxu0 %v2307_v2  ;;  %v2312_v5 = vld [vmem:[#allocation5 + $0x20] ss:$16 sps:$4 sm:$0xff]   ;;  %v2313_v6 = vld [vmem:[#allocation5 + $0x44] ss:$16 sps:$4 sm:$0xff]   ;;  %v2354_v35 = vld [vmem:[#allocation5 + $0x18c] ss:$16 sps:$4 sm:$0xff]  }
  0x3b   :  { %129 = vmatpush1.bf16.msra.mxu0 %v2309_v3  ;;  %v2315_v7 = vld [vmem:[#allocation5 + $0x40] ss:$16 sps:$4 sm:$0xff]   ;;  %v2316_v9 = vld [vmem:[#allocation5 + $0x64] ss:$16 sps:$4 sm:$0xff]   ;;  %vm2709_vm1 = vmmov 0   ;;  %v2780_v38 = vshrl.u32 %v69_v37, 7 }
  0x3c   :  { %130 = vmatprep.subr.bf16.mxu0 %v2310_v4  ;;  %v2320_v8 = vld [vmem:[#allocation5 + $0x80] ss:$16 sps:$4 sm:$0xff]   ;;  %v2323_v12 = vld [vmem:[#allocation5 + $0x184] ss:$16 sps:$4 sm:$0xff]   ;;  %2288 = vmatprep.mubr.msk.bf16.mxu1 %vm2709_vm1, %v2708_v1  ;;  %v2352_v60 = vld [vmem:[#allocation5 + $0x188] ss:$16 sps:$4 sm:$0xff]  }
  0x3d   :  { %2273 = vmatpush3.bf16.msra.mxu1 %v2320_v8  ;;  %v2324_v10 = vld [vmem:[#allocation5 + $0xa0] ss:$16 sps:$4 sm:$0xff]   ;;  %v2327_v16 = vld [vmem:[#allocation5 + $0x1a4] ss:$16 sps:$4 sm:$0xff]   ;;  %v2783_v39 = vsub.s32 0, %v2780_v38  ;;  %v2786_v41 = vsub.s32 1, %v2780_v38 }
  0x3e   :  { %2274 = vmatprep.subr.bf16.mxu1 %v2708_v1  ;;  %v2318_v11 = vld [vmem:[#allocation5 + $0x60] ss:$16 sps:$4 sm:$0xff]   ;;  %v2331_v19 = vld [vmem:[#allocation5 + $0x1c4] ss:$16 sps:$4 sm:$0xff]   ;;  %v2357_v62 = vld [vmem:[#allocation5 + $0x1ac] ss:$16 sps:$4 sm:$0xff]  }
  0x3f   :  { %131 = vmatpush1.bf16.msra.mxu0 %v2312_v5  ;;  %v2328_v13 = vld [vmem:[#allocation5 + $0xc0] ss:$16 sps:$4 sm:$0xff]   ;;  %v2335_v22 = vld [vmem:[#allocation5 + $0x1e4] ss:$16 sps:$4 sm:$0xff]   ;;  %v2355_v3 = vld [vmem:[#allocation5 + $0x1a8] ss:$16 sps:$4 sm:$0xff]  }
  0x40   :  { %132 = vmatprep.subr.bf16.mxu0 %v2313_v6  ;;  %v2321_v15 = vld [vmem:[#allocation5 + $0x180] ss:$16 sps:$4 sm:$0xff]   ;;  %v2339_v25 = vld [vmem:[#allocation5 + $0x204] ss:$16 sps:$4 sm:$0xff]   ;;  %v2360_v4 = vld [vmem:[#allocation5 + $0x1cc] ss:$16 sps:$4 sm:$0xff]  }
  0x41   :  { %2275 = vmatpush3.bf16.msra.mxu1 %v2324_v10  ;;  %v2325_v17 = vld [vmem:[#allocation5 + $0x1a0] ss:$16 sps:$4 sm:$0xff]   ;;  %v2343_v27 = vld [vmem:[#allocation5 + $0x224] ss:$16 sps:$4 sm:$0xff]   ;;  %v2363_v8 = vld [vmem:[#allocation5 + $0x1ec] ss:$16 sps:$4 sm:$0xff]  }
  0x42   :  { %2276 = vmatprep.subr.bf16.mxu1 %v2708_v1  ;;  %v2332_v18 = vld [vmem:[#allocation5 + $0xe0] ss:$16 sps:$4 sm:$0xff]   ;;  %v2347_v30 = vld [vmem:[#allocation5 + $0x244] ss:$16 sps:$4 sm:$0xff]   ;;  %s2710_s2 = smov [#allocation8]  }
  0x43   :  { %133 = vmatpush1.bf16.msra.mxu0 %v2315_v7  ;;  %v2336_v20 = vld [vmem:[#allocation5 + $0x100] ss:$16 sps:$4 sm:$0xff]   ;;  %v2351_v33 = vld [vmem:[#allocation5 + $0x264] ss:$16 sps:$4 sm:$0xff]   ;;  %v2358_v7 = vld [vmem:[#allocation5 + $0x1c8] ss:$16 sps:$4 sm:$0xff]  }
  0x44   :  { %134 = vmatprep.subr.bf16.mxu0 %v2316_v9  ;;  %v2329_v21 = vld [vmem:[#allocation5 + $0x1c0] ss:$16 sps:$4 sm:$0xff]   ;;  %v2378_v36 = vld [vmem:[#allocation5 + $0x284] ss:$16 sps:$4 sm:$0xff]   ;;  %s1996_s25 = sshll.u32 %s2710_s2, 4  ;;  %s1997_s25 = int_to_ptr.vmem [resolvable:$true] %s1996_s25 }
  0x45   :  { %2277 = vmatpush3.bf16.msra.mxu1 %v2328_v13  ;;  %v2340_v23 = vld [vmem:[#allocation5 + $0x120] ss:$16 sps:$4 sm:$0xff]   ;;  %v2381_v2 = vld [vmem:[#allocation5 + $0x2a4] ss:$16 sps:$4 sm:$0xff]   ;;  %s2670_s26 = scalar_lea.vmem %s1997_s25, 256  ;;  %p2675_p11 = scmp.lt.s32.totalorder %s1997_s25, %s1997_s25 }
  0x46   :  { %2278 = vmatprep.subr.bf16.mxu1 %v2708_v1  ;;  %v2333_v24 = vld [vmem:[#allocation5 + $0x1e0] ss:$16 sps:$4 sm:$0xff]   ;;  %v2384_v6 = vld [vmem:[#allocation5 + $0x2c4] ss:$16 sps:$4 sm:$0xff]   ;;  %p2671_p10 = scmp.ne.s32.totalorder %s1997_s25, %s2670_s26  ;;  %p2676_p12 = scmp.lt.s32.totalorder %s2670_s26, %s2670_s26 }
  0x47   :  { %135 = vmatpush1.bf16.msra.mxu0 %v2318_v11  ;;  %v2337_v26 = vld [vmem:[#allocation5 + $0x200] ss:$16 sps:$4 sm:$0xff]   ;;  %v2387_v10 = vld [vmem:[#allocation5 + $0x2e4] ss:$16 sps:$4 sm:$0xff]   ;;  %v2361_v11 = vld [vmem:[#allocation5 + $0x1e8] ss:$16 sps:$4 sm:$0xff]  }
  0x48   :  { %502 = vmatprep.subr.bf16.mxu0 %v2323_v12  ;;  %v2341_v28 = vld [vmem:[#allocation5 + $0x220] ss:$16 sps:$4 sm:$0xff]   ;;  %v2366_v12 = vld [vmem:[#allocation5 + $0x20c] ss:$16 sps:$4 sm:$0xff]   ;;  %v2417_v37 = vld [vmem:[#allocation5 + $0x3c4] ss:$16 sps:$4 sm:$0xff]   ;;  %p2677_p13 = por %p2676_p12, %p2675_p11 }
  0x49   :  { %2279 = vmatpush3.bf16.msra.mxu1 %v2332_v18  ;;  %v2344_v29 = vld [vmem:[#allocation5 + $0x140] ss:$16 sps:$4 sm:$0xff]   ;;  %v2367_v18 = vld [vmem:[#allocation5 + $0x228] ss:$16 sps:$4 sm:$0xff]  }
  0x4a   :  { %2018 = vmatmul.mubr.msk.bf16.vlgmr.msra.gmra.mrb[0].mxu0 %vm124_vm0, %v2319_v14  ;;  %2280 = vmatprep.subr.bf16.mxu1 %v2708_v1  ;;  %v2345_v31 = vld [vmem:[#allocation5 + $0x240] ss:$16 sps:$4 sm:$0xff]   ;;  %v2364_v14 = vld [vmem:[#allocation5 + $0x208] ss:$16 sps:$4 sm:$0xff]   ;;  %p2678_p0 = pnand %p2677_p13, %p2671_p10 }
  0x4b   :  { %503 = vmatpush1.bf16.msra.mxu0 %v2321_v15  ;;  %534 = vmatprep.mubr.bf16.mxu0 %v2707_v0  ;;  %v2348_v32 = vld [vmem:[#allocation5 + $0x160] ss:$16 sps:$4 sm:$0xff]   ;;  %v2369_v15 = vld [vmem:[#allocation5 + $0x22c] ss:$16 sps:$4 sm:$0xff]  }
  0x4c   :  { %504 = vmatprep.subr.bf16.mxu0 %v2327_v16  ;;  %v2349_v34 = vld [vmem:[#allocation5 + $0x260] ss:$16 sps:$4 sm:$0xff]  }
  0x4d   :  { %2281 = vmatpush3.bf16.msra.mxu1 %v2336_v20  ;;  %v67_v40 = vld [vmem:[#allocation7] ss:$8 sm:$0x3] }
  0x4e   :  { %2282 = vmatprep.subr.bf16.mxu1 %v2708_v1  ;;  %v72_v42 = vrot.slane %v67_v40, %v2783_v39  ;;  %v76_v43 = vrot.slane %v67_v40, %v2786_v41  ;;  %v2379_v5 = vld [vmem:[#allocation5 + $0x2a0] ss:$16 sps:$4 sm:$0xff]   ;;  %v2412_v40 = vld [vmem:[#allocation5 + $0x2c8] ss:$16 sps:$4 sm:$0xff]  }
  0x4f   :  { %505 = vmatpush1.bf16.msra.mxu0 %v2325_v17  ;;  %v2382_v9 = vld [vmem:[#allocation5 + $0x2c0] ss:$16 sps:$4 sm:$0xff]   ;;  %v2393_v17 = vld [vmem:[#allocation5 + $0x324] ss:$16 sps:$4 sm:$0xff]  }
  0x50   :  { %506 = vmatprep.subr.bf16.mxu0 %v2331_v19  ;;  %v2385_v13 = vld [vmem:[#allocation5 + $0x2e0] ss:$16 sps:$4 sm:$0xff]   ;;  %v2372_v19 = vld [vmem:[#allocation5 + $0x24c] ss:$16 sps:$4 sm:$0xff]  }
  0x51   :  { %2283 = vmatpush3.bf16.msra.mxu1 %v2340_v23  ;;  %v2388_v16 = vld [vmem:[#allocation5 + $0x300] ss:$16 sps:$4 sm:$0xff]   ;;  %v2375_v23 = vld [vmem:[#allocation5 + $0x26c] ss:$16 sps:$4 sm:$0xff]  }
  0x52   :  { %2284 = vmatprep.subr.bf16.mxu1 %v2708_v1  ;;  %v2391_v20 = vld [vmem:[#allocation5 + $0x320] ss:$16 sps:$4 sm:$0xff]  }
  0x53   :  { %507 = vmatpush1.bf16.msra.mxu0 %v2329_v21  ;;  %v2396_v21 = vld [vmem:[#allocation5 + $0x344] ss:$16 sps:$4 sm:$0xff]  }
  0x54   :  { %508 = vmatprep.subr.bf16.mxu0 %v2335_v22  ;;  %v2370_v22 = vld [vmem:[#allocation5 + $0x248] ss:$16 sps:$4 sm:$0xff]  }
  0x55   :  { %2285 = vmatpush3.bf16.msra.mxu1 %v2344_v29  ;;  %v2405_v29 = vld [vmem:[#allocation5 + $0x384] ss:$16 sps:$4 sm:$0xff]  }
  0x56   :  { %2286 = vmatprep.subr.bf16.mxu1 %v2708_v1  ;;  %v2376_v1 = vld [vmem:[#allocation5 + $0x280] ss:$16 sps:$4 sm:$0xff]  }
  0x57   :  { %509 = vmatpush1.bf16.msra.mxu0 %v2333_v24  ;;  %v2394_v24 = vld [vmem:[#allocation5 + $0x340] ss:$16 sps:$4 sm:$0xff]  }
  0x58   :  { %510 = vmatprep.subr.bf16.mxu0 %v2339_v25  ;;  %v2399_v25 = vld [vmem:[#allocation5 + $0x364] ss:$16 sps:$4 sm:$0xff]  }
  0x59   :  { %2287 = vmatpush3.bf16.msra.mxu1 %v2348_v32  ;;  %v2403_v32 = vld [vmem:[#allocation5 + $0x380] ss:$16 sps:$4 sm:$0xff]  }
  0x5a   :  { %545 = vmatprep.subr.bf16.mxu1 %v2354_v35  ;;  %v2414_v35 = vld [vmem:[#allocation5 + $0x2cc] ss:$16 sps:$4 sm:$0xff]  }
  0x5b   :  { %511 = vmatpush1.bf16.msra.mxu0 %v2337_v26  ;;  %v2373_v26 = vld [vmem:[#allocation5 + $0x268] ss:$16 sps:$4 sm:$0xff]  }
  0x5c   :  { %512 = vmatprep.subr.bf16.mxu0 %v2343_v27  ;;  %v2402_v27 = vld [vmem:[#allocation5 + $0x28c] ss:$16 sps:$4 sm:$0xff]  }
  0x5f   :  { %513 = vmatpush1.bf16.msra.mxu0 %v2341_v28  ;;  %v2397_v28 = vld [vmem:[#allocation5 + $0x360] ss:$16 sps:$4 sm:$0xff]  }
  0x60   :  { %514 = vmatprep.subr.bf16.mxu0 %v2347_v30  ;;  %v2400_v30 = vld [vmem:[#allocation5 + $0x288] ss:$16 sps:$4 sm:$0xff]  }
  0x63   :  { %515 = vmatpush1.bf16.msra.mxu0 %v2345_v31  ;;  %v2408_v31 = vld [vmem:[#allocation5 + $0x2ac] ss:$16 sps:$4 sm:$0xff]  }
  0x64   :  { %516 = vmatprep.subr.bf16.mxu0 %v2351_v33  ;;  %v2411_v33 = vld [vmem:[#allocation5 + $0x3a4] ss:$16 sps:$4 sm:$0xff]  }
  0x67   :  { %517 = vmatpush1.bf16.msra.mxu0 %v2349_v34  ;;  %v2406_v34 = vld [vmem:[#allocation5 + $0x2a8] ss:$16 sps:$4 sm:$0xff]  }
  0x68   :  { %813 = vmatprep.subr.bf16.mxu0 %v2378_v36  ;;  %v2409_v36 = vld [vmem:[#allocation5 + $0x3a0] ss:$16 sps:$4 sm:$0xff]  }
 0x11d   :  { %v162_v44 = vpop.f32.mrb[0].mxu0 }
 0x11e   :  { %v163_v45 = vadd.f32 %v162_v44, %v72_v42  ;;  %v164_v46 = vpop.f32.mrb[1].mxu0  ;;  %v2423_v44 = vld [vmem:[#allocation5 + $0x3e4] ss:$16 sps:$4 sm:$0xff]  }
 0x11f   :  { %v165_v47 = vadd.f32 %v164_v46, %v76_v43  ;;  %v166_v48 = vpop.f32.mrb[2].mxu0  ;;  %v2426_v46 = vld [vmem:[#allocation5 + $0x30c] ss:$16 sps:$4 sm:$0xff]  }
 0x120   :  { %v171_v49 = vmul.f32 0.2, %v163_v45  ;;  %v167_v50 = vadd.f32 %v166_v48, %v72_v42  ;;  %v168_v51 = vpop.f32.mrb[3].mxu0  ;;  %v2420_v42 = vld [vmem:[#allocation5 + $0x2ec] ss:$16 sps:$4 sm:$0xff]  }
 0x121   :  { %v172_v52 = vmul.f32 0.2, %v165_v47  ;;  %v169_v53 = vadd.f32 %v168_v51, %v76_v43  ;;  %v2415_v43 = vld [vmem:[#allocation5 + $0x3c0] ss:$16 sps:$4 sm:$0xff]   ;;  %v2429_v48 = vld [vmem:[#allocation5 + $0x404] ss:$16 sps:$4 sm:$0xff]  }
 0x122   :  { %v173_v54 = vmul.f32 0.2, %v167_v50  ;;  %v175_v56 = vmax.f32 %v163_v45, %v171_v49  ;;  %v2418_v45 = vld [vmem:[#allocation5 + $0x2e8] ss:$16 sps:$4 sm:$0xff]   ;;  %v2432_v51 = vld [vmem:[#allocation5 + $0x32c] ss:$16 sps:$4 sm:$0xff]  }
 0x123   :  { %v174_v55 = vmul.f32 0.2, %v169_v53  ;;  %v176_v58 = vmax.f32 %v165_v47, %v172_v52  ;;  %v2421_v47 = vld [vmem:[#allocation5 + $0x3e0] ss:$16 sps:$4 sm:$0xff]   ;;  %v2424_v49 = vld [vmem:[#allocation5 + $0x308] ss:$16 sps:$4 sm:$0xff]  }
 0x124   :  { %v177_v57 = vmax.f32 %v167_v50, %v173_v54  ;;  %v2427_v50 = vld [vmem:[#allocation5 + $0x400] ss:$16 sps:$4 sm:$0xff]   ;;  %v2430_v52 = vld [vmem:[#allocation5 + $0x328] ss:$16 sps:$4 sm:$0xff]  }
 0x125   :  { %v178_v59 = vmax.f32 %v169_v53, %v174_v55  ;;  %v2435_v53 = vld [vmem:[#allocation5 + $0x424] ss:$16 sps:$4 sm:$0xff]   ;;  %v2433_v54 = vld [vmem:[#allocation5 + $0x420] ss:$16 sps:$4 sm:$0xff]   ;;  %v2438_v55 = vld [vmem:[#allocation5 + $0x34c] ss:$16 sps:$4 sm:$0xff]  }
 0x126   :  { %v179_v61 = vpack.c.bf16 %v177_v57, %v175_v56  ;;  %v2436_v56 = vld [vmem:[#allocation5 + $0x348] ss:$16 sps:$4 sm:$0xff]   ;;  %v2441_v57 = vld [vmem:[#allocation5 + $0x444] ss:$16 sps:$4 sm:$0xff]  }
 0x127   :  { %v2790_v63 = vpack.c.bf16 %v178_v59, %v176_v58  ;;  %v2439_v58 = vld [vmem:[#allocation5 + $0x440] ss:$16 sps:$4 sm:$0xff]   ;;  %v2444_v59 = vld [vmem:[#allocation5 + $0x36c] ss:$16 sps:$4 sm:$0xff]  }
 0x128   :  { %2289 = vmatmul.mubr.bf16.vlgmr.msra.gmra.mrb[0].mxu1 %v179_v61  ;;  %v2447_v61 = vld [vmem:[#allocation5 + $0x464] ss:$16 sps:$4 sm:$0xff]  }
 0x129   :  { %546 = vmatpush1.bf16.msra.mxu1 %v2352_v60  ;;  %535 = vmatmul.mubr.bf16.vlgmr.msra.gmra.mrb[4].mxu0 %v2790_v63  ;;  %v2442_v60 = vld [vmem:[#allocation5 + $0x368] ss:$16 sps:$4 sm:$0xff]  }
 0x12a   :  { %547 = vmatprep.subr.bf16.mxu1 %v2357_v62  ;;  %577 = vmatprep.mubr.bf16.mxu1 %v2707_v0  ;;  %v2390_v0 = vld [vmem:[#allocation5 + $0x304] ss:$16 sps:$4 sm:$0xff]   ;;  %v2445_v62 = vld [vmem:[#allocation5 + $0x460] ss:$16 sps:$4 sm:$0xff]  }
 0x12b   :  { %814 = vmatpush1.bf16.msra.mxu0 %v2376_v1  ;;  %v2450_v1 = vld [vmem:[#allocation5 + $0x38c] ss:$16 sps:$4 sm:$0xff]  }
 0x12c   :  { %815 = vmatprep.subr.bf16.mxu0 %v2381_v2  ;;  %v2451_v2 = vld [vmem:[#allocation5 + $0x3a8] ss:$16 sps:$4 sm:$0xff]  }
 0x12d   :  { %548 = vmatpush1.bf16.msra.mxu1 %v2355_v3  ;;  %v2453_v3 = vld [vmem:[#allocation5 + $0x3ac] ss:$16 sps:$4 sm:$0xff]  }
 0x12e   :  { %549 = vmatprep.subr.bf16.mxu1 %v2360_v4  ;;  %v2456_v4 = vld [vmem:[#allocation5 + $0x3cc] ss:$16 sps:$4 sm:$0xff]  }
 0x12f   :  { %816 = vmatpush1.bf16.msra.mxu0 %v2379_v5  ;;  %v2454_v5 = vld [vmem:[#allocation5 + $0x3c8] ss:$16 sps:$4 sm:$0xff]  }
 0x130   :  { %817 = vmatprep.subr.bf16.mxu0 %v2384_v6  ;;  %v2459_v6 = vld [vmem:[#allocation5 + $0x3ec] ss:$16 sps:$4 sm:$0xff]  }
 0x131   :  { %550 = vmatpush1.bf16.msra.mxu1 %v2358_v7  ;;  %v2457_v7 = vld [vmem:[#allocation5 + $0x3e8] ss:$16 sps:$4 sm:$0xff]  }
 0x132   :  { %551 = vmatprep.subr.bf16.mxu1 %v2363_v8  ;;  %v2462_v8 = vld [vmem:[#allocation5 + $0x40c] ss:$16 sps:$4 sm:$0xff]  }
 0x133   :  { %818 = vmatpush1.bf16.msra.mxu0 %v2382_v9  ;;  %v2460_v9 = vld [vmem:[#allocation5 + $0x408] ss:$16 sps:$4 sm:$0xff]  }
 0x134   :  { %819 = vmatprep.subr.bf16.mxu0 %v2387_v10  ;;  %v2465_v10 = vld [vmem:[#allocation5 + $0x42c] ss:$16 sps:$4 sm:$0xff]  }
 0x135   :  { %552 = vmatpush1.bf16.msra.mxu1 %v2361_v11  ;;  %v2463_v11 = vld [vmem:[#allocation5 + $0x428] ss:$16 sps:$4 sm:$0xff]  }
 0x136   :  { %553 = vmatprep.subr.bf16.mxu1 %v2366_v12  ;;  %v2468_v12 = vld [vmem:[#allocation5 + $0x44c] ss:$16 sps:$4 sm:$0xff]  }
 0x137   :  { %820 = vmatpush1.bf16.msra.mxu0 %v2385_v13  ;;  %v2466_v13 = vld [vmem:[#allocation5 + $0x448] ss:$16 sps:$4 sm:$0xff]  }
 0x138   :  { %821 = vmatprep.subr.bf16.mxu0 %v2390_v0  ;;  %v2471_v0 = vld [vmem:[#allocation5 + $0x46c] ss:$16 sps:$4 sm:$0xff]  }
 0x139   :  { %554 = vmatpush1.bf16.msra.mxu1 %v2364_v14  ;;  %v2469_v14 = vld [vmem:[#allocation5 + $0x468] ss:$16 sps:$4 sm:$0xff]  }
 0x13a   :  { %555 = vmatprep.subr.bf16.mxu1 %v2369_v15  ;;  %v2474_v15 = vld [vmem:[#allocation5 + $0x484] ss:$16 sps:$4 sm:$0xff]  }
 0x13b   :  { %822 = vmatpush1.bf16.msra.mxu0 %v2388_v16  ;;  %v2498_v16 = vld [vmem:[#allocation5 + $0x48c] ss:$16 sps:$4 sm:$0xff]  }
 0x13c   :  { %823 = vmatprep.subr.bf16.mxu0 %v2393_v17  ;;  %v320_v17 = vld [vmem:[#allocation7 + $0x40] ss:$8 sm:$0xf] }
 0x13d   :  { %556 = vmatpush1.bf16.msra.mxu1 %v2367_v18  ;;  %v325_v18 = vrot.slane %v320_v17, %v2783_v39 }
 0x13e   :  { %557 = vmatprep.subr.bf16.mxu1 %v2372_v19  ;;  %v329_v19 = vrot.slane %v320_v17, %v2786_v41 }
 0x13f   :  { %824 = vmatpush1.bf16.msra.mxu0 %v2391_v20 }
 0x140   :  { %825 = vmatprep.subr.bf16.mxu0 %v2396_v21 }
 0x141   :  { %558 = vmatpush1.bf16.msra.mxu1 %v2370_v22 }
 0x142   :  { %559 = vmatprep.subr.bf16.mxu1 %v2375_v23 }
 0x143   :  { %826 = vmatpush1.bf16.msra.mxu0 %v2394_v24 }
 0x144   :  { %827 = vmatprep.subr.bf16.mxu0 %v2399_v25 }
 0x145   :  { %560 = vmatpush1.bf16.msra.mxu1 %v2373_v26 }
 0x146   :  { %1071 = vmatprep.subr.bf16.mxu1 %v2402_v27 }
 0x147   :  { %828 = vmatpush1.bf16.msra.mxu0 %v2397_v28 }
 0x148   :  { %578 = vmatmul.mubr.bf16.vlgmr.msra.gmra.mrb[4].mxu1 %v2790_v63  ;;  %829 = vmatprep.subr.bf16.mxu0 %v2405_v29  ;;  %v2448_v63 = vld [vmem:[#allocation5 + $0x388] ss:$16 sps:$4 sm:$0xff]  }
 0x149   :  { %1072 = vmatpush1.bf16.msra.mxu1 %v2400_v30 }
 0x14a   :  { %1073 = vmatprep.subr.bf16.mxu1 %v2408_v31 }
 0x14b   :  { %830 = vmatpush1.bf16.msra.mxu0 %v2403_v32 }
 0x14c   :  { %831 = vmatprep.subr.bf16.mxu0 %v2411_v33 }
 0x14d   :  { %1074 = vmatpush1.bf16.msra.mxu1 %v2406_v34 }
 0x14e   :  { %1075 = vmatprep.subr.bf16.mxu1 %v2414_v35 }
 0x14f   :  { %832 = vmatpush1.bf16.msra.mxu0 %v2409_v36 }
 0x150   :  { %833 = vmatprep.subr.bf16.mxu0 %v2417_v37 }
 0x151   :  { %1076 = vmatpush1.bf16.msra.mxu1 %v2412_v40 }
 0x152   :  { %1077 = vmatprep.subr.bf16.mxu1 %v2420_v42 }
 0x153   :  { %834 = vmatpush1.bf16.msra.mxu0 %v2415_v43 }
 0x154   :  { %835 = vmatprep.subr.bf16.mxu0 %v2423_v44 }
 0x155   :  { %1078 = vmatpush1.bf16.msra.mxu1 %v2418_v45  ;;  %v2472_v45 = vld [vmem:[#allocation5 + $0x480] ss:$16 sps:$4 sm:$0xff]  }
 0x156   :  { %1079 = vmatprep.subr.bf16.mxu1 %v2426_v46  ;;  %v2477_v46 = vld [vmem:[#allocation5 + $0x4a4] ss:$16 sps:$4 sm:$0xff]  }
 0x157   :  { %836 = vmatpush1.bf16.msra.mxu0 %v2421_v47  ;;  %v2475_v47 = vld [vmem:[#allocation5 + $0x4a0] ss:$16 sps:$4 sm:$0xff]  }
 0x158   :  { %837 = vmatprep.subr.bf16.mxu0 %v2429_v48  ;;  %v2480_v48 = vld [vmem:[#allocation5 + $0x4c4] ss:$16 sps:$4 sm:$0xff]  }
 0x159   :  { %1080 = vmatpush1.bf16.msra.mxu1 %v2424_v49  ;;  %v2478_v49 = vld [vmem:[#allocation5 + $0x4c0] ss:$16 sps:$4 sm:$0xff]  }
 0x15a   :  { %1081 = vmatprep.subr.bf16.mxu1 %v2432_v51  ;;  %v2481_v51 = vld [vmem:[#allocation5 + $0x4e0] ss:$16 sps:$4 sm:$0xff]  }
 0x15b   :  { %838 = vmatpush1.bf16.msra.mxu0 %v2427_v50  ;;  %v2483_v50 = vld [vmem:[#allocation5 + $0x4e4] ss:$16 sps:$4 sm:$0xff]  }
 0x15c   :  { %839 = vmatprep.subr.bf16.mxu0 %v2435_v53  ;;  %v332_v53 = vsub.s32 2, %v2780_v38 }
 0x15d   :  { %1082 = vmatpush1.bf16.msra.mxu1 %v2430_v52  ;;  %v2486_v52 = vld [vmem:[#allocation5 + $0x504] ss:$16 sps:$4 sm:$0xff]  }
 0x15e   :  { %1083 = vmatprep.subr.bf16.mxu1 %v2438_v55  ;;  %v2484_v55 = vld [vmem:[#allocation5 + $0x500] ss:$16 sps:$4 sm:$0xff]  }
 0x15f   :  { %840 = vmatpush1.bf16.msra.mxu0 %v2433_v54  ;;  %v336_v54 = vsub.s32 3, %v2780_v38  ;;  %v2490_v38 = vld [vmem:[#allocation5 + $0x540] ss:$16 sps:$4 sm:$0xff]  }
 0x160   :  { %841 = vmatprep.subr.bf16.mxu0 %v2441_v57  ;;  %v333_v57 = vrot.slane %v320_v17, %v332_v53  ;;  %v2544_v53 = vld [vmem:[#allocation5 + $0x588] ss:$16 sps:$4 sm:$0xff]  }
 0x161   :  { %1084 = vmatpush1.bf16.msra.mxu1 %v2436_v56  ;;  %v2489_v56 = vld [vmem:[#allocation5 + $0x524] ss:$16 sps:$4 sm:$0xff]  }
 0x162   :  { %1085 = vmatprep.subr.bf16.mxu1 %v2444_v59  ;;  %v2487_v59 = vld [vmem:[#allocation5 + $0x520] ss:$16 sps:$4 sm:$0xff]  }
 0x163   :  { %842 = vmatpush1.bf16.msra.mxu0 %v2439_v58  ;;  %v337_v58 = vrot.slane %v320_v17, %v336_v54  ;;  %v2546_v54 = vld [vmem:[#allocation5 + $0x58c] ss:$16 sps:$4 sm:$0xff]  }
 0x164   :  { %843 = vmatprep.subr.bf16.mxu0 %v2447_v61  ;;  %v2492_v61 = vld [vmem:[#allocation5 + $0x544] ss:$16 sps:$4 sm:$0xff]  }
 0x165   :  { %1086 = vmatpush1.bf16.msra.mxu1 %v2442_v60 }
 0x166   :  { %1087 = vmatprep.subr.bf16.mxu1 %v2450_v1 }
 0x167   :  { %844 = vmatpush1.bf16.msra.mxu0 %v2445_v62 }
 0x168   :  { %1329 = vmatprep.subr.bf16.mxu0 %v2474_v15  ;;  %v2501_v15 = vld [vmem:[#allocation5 + $0x584] ss:$16 sps:$4 sm:$0xff]  }
 0x169   :  { %1088 = vmatpush1.bf16.msra.mxu1 %v2448_v63 }
 0x16a   :  { %1089 = vmatprep.subr.bf16.mxu1 %v2453_v3 }
 0x16d   :  { %1090 = vmatpush1.bf16.msra.mxu1 %v2451_v2 }
 0x16e   :  { %1091 = vmatprep.subr.bf16.mxu1 %v2456_v4 }
 0x171   :  { %1092 = vmatpush1.bf16.msra.mxu1 %v2454_v5 }
 0x172   :  { %1093 = vmatprep.subr.bf16.mxu1 %v2459_v6 }
 0x175   :  { %1094 = vmatpush1.bf16.msra.mxu1 %v2457_v7 }
 0x176   :  { %1095 = vmatprep.subr.bf16.mxu1 %v2462_v8  ;;  %v2495_v8 = vld [vmem:[#allocation5 + $0x564] ss:$16 sps:$4 sm:$0xff]  }
 0x179   :  { %1096 = vmatpush1.bf16.msra.mxu1 %v2460_v9 }
 0x17a   :  { %1097 = vmatprep.subr.bf16.mxu1 %v2465_v10 }
 0x17d   :  { %1098 = vmatpush1.bf16.msra.mxu1 %v2463_v11 }
 0x17e   :  { %1099 = vmatprep.subr.bf16.mxu1 %v2468_v12 }
 0x181   :  { %1100 = vmatpush1.bf16.msra.mxu1 %v2466_v13  ;;  %v2493_v13 = vld [vmem:[#allocation5 + $0x560] ss:$16 sps:$4 sm:$0xff]  }
 0x182   :  { %1101 = vmatprep.subr.bf16.mxu1 %v2471_v0 }
 0x185   :  { %1102 = vmatpush1.bf16.msra.mxu1 %v2469_v14 }
 0x186   :  { %1587 = vmatprep.subr.bf16.mxu1 %v2498_v16 }
 0x1fb   :  { %v2797_v20 = vpop.f32.mrb[0].mxu1 }
 0x1fc   :  { %v2290_v21 = vpop.f32.mrb[1].mxu1  ;;  %v536_v22 = vpop.f32.mrb[4].mxu0 }
 0x1fd   :  { %v537_v23 = vadd.f32 %v536_v22, %v325_v18  ;;  %v2799_v24 = vpop.f32.mrb[2].mxu1  ;;  %v538_v25 = vpop.f32.mrb[5].mxu0  ;;  %v2504_v21 = vld [vmem:[#allocation5 + $0x4ac] ss:$16 sps:$4 sm:$0xff]   ;;  %v2507_v22 = vld [vmem:[#allocation5 + $0x5a4] ss:$16 sps:$4 sm:$0xff]  }
 0x1fe   :  { %v539_v26 = vadd.f32 %v538_v25, %v329_v19  ;;  %v2291_v27 = vpop.f32.mrb[3].mxu1  ;;  %v540_v28 = vpop.f32.mrb[6].mxu0  ;;  %v2505_v25 = vld [vmem:[#allocation5 + $0x5a0] ss:$16 sps:$4 sm:$0xff]  }
 0x1ff   :  { %v588_v29 = vmul.f32 0.2, %v537_v23  ;;  %v541_v30 = vadd.f32 %v540_v28, %v325_v18  ;;  %v542_v31 = vpop.f32.mrb[7].mxu0  ;;  %v2496_v18 = vld [vmem:[#allocation5 + $0x488] ss:$16 sps:$4 sm:$0xff]  }
 0x200   :  { %v589_v32 = vmul.f32 0.2, %v539_v26  ;;  %v543_v33 = vadd.f32 %v542_v31, %v329_v19  ;;  %v2499_v19 = vld [vmem:[#allocation5 + $0x580] ss:$16 sps:$4 sm:$0xff]   ;;  %v2513_v27 = vld [vmem:[#allocation5 + $0x5c4] ss:$16 sps:$4 sm:$0xff]  }
 0x201   :  { %v592_v34 = vmul.f32 0.2, %v541_v30  ;;  %v596_v36 = vmax.f32 %v537_v23, %v588_v29  ;;  %v2502_v23 = vld [vmem:[#allocation5 + $0x4a8] ss:$16 sps:$4 sm:$0xff]   ;;  %v2511_v29 = vld [vmem:[#allocation5 + $0x5c0] ss:$16 sps:$4 sm:$0xff]  }
 0x202   :  { %v593_v35 = vmul.f32 0.2, %v543_v33  ;;  %v597_v40 = vmax.f32 %v539_v26, %v589_v32  ;;  %v2510_v26 = vld [vmem:[#allocation5 + $0x4cc] ss:$16 sps:$4 sm:$0xff]   ;;  %v2508_v28 = vld [vmem:[#allocation5 + $0x4c8] ss:$16 sps:$4 sm:$0xff]  }
 0x203   :  { %v600_v37 = vmax.f32 %v541_v30, %v592_v34  ;;  %v2516_v30 = vld [vmem:[#allocation5 + $0x4ec] ss:$16 sps:$4 sm:$0xff]   ;;  %v2519_v31 = vld [vmem:[#allocation5 + $0x5e4] ss:$16 sps:$4 sm:$0xff]   ;;  %v2514_v32 = vld [vmem:[#allocation5 + $0x4e8] ss:$16 sps:$4 sm:$0xff]  }
 0x204   :  { %v601_v42 = vmax.f32 %v543_v33, %v593_v35  ;;  %v2517_v33 = vld [vmem:[#allocation5 + $0x5e0] ss:$16 sps:$4 sm:$0xff]   ;;  %v2522_v34 = vld [vmem:[#allocation5 + $0x50c] ss:$16 sps:$4 sm:$0xff]   ;;  %v2525_v35 = vld [vmem:[#allocation5 + $0x604] ss:$16 sps:$4 sm:$0xff]  }
 0x205   :  { %v604_v43 = vpack.c.bf16 %v600_v37, %v596_v36  ;;  %v2520_v36 = vld [vmem:[#allocation5 + $0x508] ss:$16 sps:$4 sm:$0xff]   ;;  %v2523_v37 = vld [vmem:[#allocation5 + $0x600] ss:$16 sps:$4 sm:$0xff]  }
 0x206   :  { %v605_v44 = vpack.c.bf16 %v601_v42, %v597_v40  ;;  %v2528_v40 = vld [vmem:[#allocation5 + $0x52c] ss:$16 sps:$4 sm:$0xff]   ;;  %v2526_v42 = vld [vmem:[#allocation5 + $0x528] ss:$16 sps:$4 sm:$0xff]  }
 0x208   :  { %845 = vmatprep.mubr.bf16.mxu0 %v605_v44  ;;  %v2529_v44 = vld [vmem:[#allocation5 + $0x620] ss:$16 sps:$4 sm:$0xff]  }
 0x209   :  { %846 = vmatmul.mubr.bf16.vlgmr.msra.gmra.mrb[8].mxu0 %v604_v43  ;;  %v2531_v43 = vld [vmem:[#allocation5 + $0x624] ss:$16 sps:$4 sm:$0xff]  }
 0x20a   :  { %1330 = vmatpush1.bf16.msra.mxu0 %v2472_v45  ;;  %v2534_v45 = vld [vmem:[#allocation5 + $0x54c] ss:$16 sps:$4 sm:$0xff]  }
 0x20b   :  { %1331 = vmatprep.subr.bf16.mxu0 %v2477_v46  ;;  %v2532_v46 = vld [vmem:[#allocation5 + $0x548] ss:$16 sps:$4 sm:$0xff]  }
 0x20e   :  { %1332 = vmatpush1.bf16.msra.mxu0 %v2475_v47  ;;  %v2537_v47 = vld [vmem:[#allocation5 + $0x644] ss:$16 sps:$4 sm:$0xff]  }
 0x20f   :  { %1333 = vmatprep.subr.bf16.mxu0 %v2480_v48  ;;  %v2535_v48 = vld [vmem:[#allocation5 + $0x640] ss:$16 sps:$4 sm:$0xff]  }
 0x212   :  { %1334 = vmatpush1.bf16.msra.mxu0 %v2478_v49  ;;  %v2540_v49 = vld [vmem:[#allocation5 + $0x56c] ss:$16 sps:$4 sm:$0xff]  }
 0x213   :  { %1335 = vmatprep.subr.bf16.mxu0 %v2483_v50  ;;  %v2538_v50 = vld [vmem:[#allocation5 + $0x568] ss:$16 sps:$4 sm:$0xff]  }
 0x216   :  { %1336 = vmatpush1.bf16.msra.mxu0 %v2481_v51  ;;  %v2543_v51 = vld [vmem:[#allocation5 + $0x664] ss:$16 sps:$4 sm:$0xff]  }
 0x217   :  { %1337 = vmatprep.subr.bf16.mxu0 %v2486_v52  ;;  %v2541_v52 = vld [vmem:[#allocation5 + $0x660] ss:$16 sps:$4 sm:$0xff]  }
 0x21a   :  { %1338 = vmatpush1.bf16.msra.mxu0 %v2484_v55  ;;  %v2547_v55 = vld [vmem:[#allocation5 + $0x5a8] ss:$16 sps:$4 sm:$0xff]  }
 0x21b   :  { %v579_v60 = vpop.f32.mrb[4].mxu1  ;;  %1339 = vmatprep.subr.bf16.mxu0 %v2489_v56  ;;  %v2549_v56 = vld [vmem:[#allocation5 + $0x5ac] ss:$16 sps:$4 sm:$0xff]  }
 0x21c   :  { %v580_v62 = vadd.f32 %v579_v60, %v333_v57  ;;  %v581_v63 = vpop.f32.mrb[5].mxu1  ;;  %v2553_v60 = vld [vmem:[#allocation5 + $0x5e8] ss:$16 sps:$4 sm:$0xff]  }
 0x21d   :  { %v582_v1 = vadd.f32 %v581_v63, %v337_v58  ;;  %v583_v2 = vpop.f32.mrb[6].mxu1  ;;  %v2561_v63 = vld [vmem:[#allocation5 + $0x62c] ss:$16 sps:$4 sm:$0xff]  }
 0x21e   :  { %v590_v3 = vmul.f32 0.2, %v580_v62  ;;  %v584_v4 = vadd.f32 %v583_v2, %v333_v57  ;;  %v585_v5 = vpop.f32.mrb[7].mxu1  ;;  %1340 = vmatpush1.bf16.msra.mxu0 %v2487_v59  ;;  %v2552_v57 = vld [vmem:[#allocation5 + $0x5cc] ss:$16 sps:$4 sm:$0xff]  }
 0x21f   :  { %v591_v6 = vmul.f32 0.2, %v582_v1  ;;  %v586_v7 = vadd.f32 %v585_v5, %v337_v58  ;;  %1341 = vmatprep.subr.bf16.mxu0 %v2492_v61  ;;  %v2550_v58 = vld [vmem:[#allocation5 + $0x5c8] ss:$16 sps:$4 sm:$0xff]   ;;  %v2555_v59 = vld [vmem:[#allocation5 + $0x5ec] ss:$16 sps:$4 sm:$0xff]  }
 0x220   :  { %v594_v9 = vmul.f32 0.2, %v584_v4  ;;  %v598_v11 = vmax.f32 %v580_v62, %v590_v3  ;;  %v2558_v61 = vld [vmem:[#allocation5 + $0x60c] ss:$16 sps:$4 sm:$0xff]   ;;  %v2556_v62 = vld [vmem:[#allocation5 + $0x608] ss:$16 sps:$4 sm:$0xff]  }
 0x221   :  { %v595_v10 = vmul.f32 0.2, %v586_v7  ;;  %v599_v0 = vmax.f32 %v582_v1, %v591_v6  ;;  %v2559_v1 = vld [vmem:[#allocation5 + $0x628] ss:$16 sps:$4 sm:$0xff]   ;;  %v2564_v2 = vld [vmem:[#allocation5 + $0x64c] ss:$16 sps:$4 sm:$0xff]  }
 0x222   :  { %v602_v12 = vmax.f32 %v584_v4, %v594_v9  ;;  %1342 = vmatpush1.bf16.msra.mxu0 %v2490_v38  ;;  %v2562_v3 = vld [vmem:[#allocation5 + $0x648] ss:$16 sps:$4 sm:$0xff]   ;;  %v2567_v4 = vld [vmem:[#allocation5 + $0x66c] ss:$16 sps:$4 sm:$0xff]   ;;  %v2568_v38 = vld [vmem:[#allocation5 + $0x780] ss:$16 sps:$4 sm:$0xff]  }
 0x223   :  { %v603_v14 = vmax.f32 %v586_v7, %v595_v10  ;;  %1343 = vmatprep.subr.bf16.mxu0 %v2495_v8  ;;  %v2565_v5 = vld [vmem:[#allocation5 + $0x668] ss:$16 sps:$4 sm:$0xff]  }
 0x224   :  { %v606_v16 = vpack.c.bf16 %v602_v12, %v598_v11  ;;  %v641_v6 = vld [vmem:[#allocation7 + $0x60] ss:$8 sm:$0x3] }
 0x225   :  { %v607_v17 = vpack.c.bf16 %v603_v14, %v599_v0  ;;  %v646_v7 = vrot.slane %v641_v6, %v2783_v39  ;;  %v650_v8 = vrot.slane %v641_v6, %v2786_v41  ;;  %v2587_v6 = vld [vmem:[#allocation5 + $0x6a4] ss:$16 sps:$4 sm:$0xff]  }
 0x226   :  { %1344 = vmatpush1.bf16.msra.mxu0 %v2493_v13 }
 0x227   :  { %1103 = vmatprep.mubr.bf16.mxu1 %v607_v17  ;;  %1345 = vmatprep.subr.bf16.mxu0 %v2501_v15 }
 0x228   :  { %1104 = vmatmul.mubr.bf16.vlgmr.msra.gmra.mrb[8].mxu1 %v606_v16 }
 0x229   :  { %1588 = vmatpush1.bf16.msra.mxu1 %v2496_v18 }
 0x22a   :  { %1346 = vmatpush1.bf16.msra.mxu0 %v2499_v19  ;;  %1589 = vmatprep.subr.bf16.mxu1 %v2504_v21 }
 0x22b   :  { %1347 = vmatprep.subr.bf16.mxu0 %v2507_v22 }
 0x22d   :  { %1590 = vmatpush1.bf16.msra.mxu1 %v2502_v23 }
 0x22e   :  { %1348 = vmatpush1.bf16.msra.mxu0 %v2505_v25  ;;  %1591 = vmatprep.subr.bf16.mxu1 %v2510_v26 }
 0x22f   :  { %1349 = vmatprep.subr.bf16.mxu0 %v2513_v27 }
 0x231   :  { %1592 = vmatpush1.bf16.msra.mxu1 %v2508_v28  ;;  %v899_v28 = vld [vmem:[#allocation7 + $0x70] ss:$8 sm:$0x3] }
 0x232   :  { %1350 = vmatpush1.bf16.msra.mxu0 %v2511_v29  ;;  %1593 = vmatprep.subr.bf16.mxu1 %v2516_v30  ;;  %v904_v29 = vrot.slane %v899_v28, %v2783_v39  ;;  %v908_v30 = vrot.slane %v899_v28, %v2786_v41 }
 0x233   :  { %1351 = vmatprep.subr.bf16.mxu0 %v2519_v31 }
 0x235   :  { %1594 = vmatpush1.bf16.msra.mxu1 %v2514_v32 }
 0x236   :  { %1352 = vmatpush1.bf16.msra.mxu0 %v2517_v33  ;;  %1595 = vmatprep.subr.bf16.mxu1 %v2522_v34 }
 0x237   :  { %1353 = vmatprep.subr.bf16.mxu0 %v2525_v35 }
 0x239   :  { %1596 = vmatpush1.bf16.msra.mxu1 %v2520_v36 }
 0x23a   :  { %1354 = vmatpush1.bf16.msra.mxu0 %v2523_v37  ;;  %1597 = vmatprep.subr.bf16.mxu1 %v2528_v40 }
 0x23b   :  { %1355 = vmatprep.subr.bf16.mxu0 %v2531_v43 }
 0x23d   :  { %1598 = vmatpush1.bf16.msra.mxu1 %v2526_v42 }
 0x23e   :  { %1356 = vmatpush1.bf16.msra.mxu0 %v2529_v44  ;;  %1599 = vmatprep.subr.bf16.mxu1 %v2534_v45 }
 0x23f   :  { %1357 = vmatprep.subr.bf16.mxu0 %v2537_v47 }
 0x241   :  { %1600 = vmatpush1.bf16.msra.mxu1 %v2532_v46 }
 0x242   :  { %1358 = vmatpush1.bf16.msra.mxu0 %v2535_v48  ;;  %1601 = vmatprep.subr.bf16.mxu1 %v2540_v49 }
 0x243   :  { %1359 = vmatprep.subr.bf16.mxu0 %v2543_v51 }
 0x245   :  { %1602 = vmatpush1.bf16.msra.mxu1 %v2538_v50 }
 0x246   :  { %1360 = vmatpush1.bf16.msra.mxu0 %v2541_v52  ;;  %1603 = vmatprep.subr.bf16.mxu1 %v2546_v54  ;;  %v2569_v52 = vld [vmem:[#allocation5 + $0x680] ss:$16 sps:$4 sm:$0xff]  }
 0x247   :  { %v2571_v54 = vld [vmem:[#allocation5 + $0x6a0] ss:$16 sps:$4 sm:$0xff]  }
 0x249   :  { %1604 = vmatpush1.bf16.msra.mxu1 %v2544_v53  ;;  %v2570_v53 = vld [vmem:[#allocation5 + $0x7a0] ss:$16 sps:$4 sm:$0xff]  }
 0x24a   :  { %1605 = vmatprep.subr.bf16.mxu1 %v2549_v56  ;;  %v2573_v56 = vld [vmem:[#allocation5 + $0x6c0] ss:$16 sps:$4 sm:$0xff]  }
 0x24d   :  { %1606 = vmatpush1.bf16.msra.mxu1 %v2547_v55  ;;  %v2572_v55 = vld [vmem:[#allocation5 + $0x7c0] ss:$16 sps:$4 sm:$0xff]  }
 0x24e   :  { %1607 = vmatprep.subr.bf16.mxu1 %v2552_v57  ;;  %v2574_v57 = vld [vmem:[#allocation5 + $0x7e0] ss:$16 sps:$4 sm:$0xff]  }
 0x251   :  { %1608 = vmatpush1.bf16.msra.mxu1 %v2550_v58  ;;  %v2575_v58 = vld [vmem:[#allocation5 + $0x6e0] ss:$16 sps:$4 sm:$0xff]  }
 0x252   :  { %1609 = vmatprep.subr.bf16.mxu1 %v2555_v59  ;;  %v2576_v59 = vld [vmem:[#allocation5 + $0x800] ss:$16 sps:$4 sm:$0xff]  }
 0x255   :  { %1610 = vmatpush1.bf16.msra.mxu1 %v2553_v60  ;;  %v2577_v60 = vld [vmem:[#allocation5 + $0x700] ss:$16 sps:$4 sm:$0xff]  }
 0x256   :  { %1611 = vmatprep.subr.bf16.mxu1 %v2558_v61  ;;  %v2578_v61 = vld [vmem:[#allocation5 + $0x820] ss:$16 sps:$4 sm:$0xff]  }
 0x259   :  { %1612 = vmatpush1.bf16.msra.mxu1 %v2556_v62  ;;  %v2579_v62 = vld [vmem:[#allocation5 + $0x720] ss:$16 sps:$4 sm:$0xff]  }
 0x25a   :  { %1613 = vmatprep.subr.bf16.mxu1 %v2561_v63  ;;  %v2580_v63 = vld [vmem:[#allocation5 + $0x840] ss:$16 sps:$4 sm:$0xff]  }
 0x25d   :  { %1614 = vmatpush1.bf16.msra.mxu1 %v2559_v1  ;;  %v2581_v1 = vld [vmem:[#allocation5 + $0x740] ss:$16 sps:$4 sm:$0xff]  }
 0x25e   :  { %1615 = vmatprep.subr.bf16.mxu1 %v2564_v2  ;;  %v2582_v2 = vld [vmem:[#allocation5 + $0x860] ss:$16 sps:$4 sm:$0xff]  }
 0x261   :  { %1616 = vmatpush1.bf16.msra.mxu1 %v2562_v3  ;;  %v2583_v3 = vld [vmem:[#allocation5 + $0x760] ss:$16 sps:$4 sm:$0xff]  }
 0x262   :  { %1617 = vmatprep.subr.bf16.mxu1 %v2567_v4  ;;  %v2584_v4 = vld [vmem:[#allocation5 + $0x784] ss:$16 sps:$4 sm:$0xff]  }
 0x263   :  { %2228 = vmatprep.subr.bf16.mxu0 %v2584_v4 }
 0x265   :  { %1618 = vmatpush1.bf16.msra.mxu1 %v2565_v5  ;;  %v2585_v5 = vld [vmem:[#allocation5 + $0x684] ss:$16 sps:$4 sm:$0xff]  }
 0x266   :  { %2250 = vmatprep.subr.bf16.mxu1 %v2568_v38  ;;  %v2586_v38 = vld [vmem:[#allocation5 + $0x7a4] ss:$16 sps:$4 sm:$0xff]  }
 0x2dc   :  { %v847_v9 = vpop.f32.mrb[8].mxu0 }
 0x2dd   :  { %v848_v10 = vadd.f32 %v847_v9, %v646_v7  ;;  %v849_v11 = vpop.f32.mrb[9].mxu0  ;;  %v2590_v9 = vld [vmem:[#allocation5 + $0x7e4] ss:$16 sps:$4 sm:$0xff]  }
 0x2de   :  { %v850_v12 = vadd.f32 %v849_v11, %v650_v8  ;;  %v851_v13 = vpop.f32.mrb[10].mxu0  ;;  %v2592_v11 = vld [vmem:[#allocation5 + $0x804] ss:$16 sps:$4 sm:$0xff]  }
 0x2df   :  { %v856_v0 = vmul.f32 0.2, %v848_v10  ;;  %v852_v14 = vadd.f32 %v851_v13, %v646_v7  ;;  %v853_v15 = vpop.f32.mrb[11].mxu0  ;;  %v2588_v7 = vld [vmem:[#allocation5 + $0x7c4] ss:$16 sps:$4 sm:$0xff]  }
 0x2e0   :  { %v857_v16 = vmul.f32 0.2, %v850_v12  ;;  %v854_v17 = vadd.f32 %v853_v15, %v650_v8  ;;  %v2589_v8 = vld [vmem:[#allocation5 + $0x6c4] ss:$16 sps:$4 sm:$0xff]  }
 0x2e1   :  { %v858_v18 = vmul.f32 0.2, %v852_v14  ;;  %v860_v21 = vmax.f32 %v848_v10, %v856_v0  ;;  %v2591_v10 = vld [vmem:[#allocation5 + $0x6e4] ss:$16 sps:$4 sm:$0xff]  }
 0x2e2   :  { %v859_v19 = vmul.f32 0.2, %v854_v17  ;;  %v861_v23 = vmax.f32 %v850_v12, %v857_v16  ;;  %v2593_v12 = vld [vmem:[#allocation5 + $0x704] ss:$16 sps:$4 sm:$0xff]  }
 0x2e3   :  { %v862_v22 = vmax.f32 %v852_v14, %v858_v18  ;;  %v2594_v13 = vld [vmem:[#allocation5 + $0x824] ss:$16 sps:$4 sm:$0xff]   ;;  %v1157_v18 = vld [vmem:[#allocation7 + $0x80] ss:$8 sm:$0x3] }
 0x2e4   :  { %v863_v25 = vmax.f32 %v854_v17, %v859_v19  ;;  %v2595_v0 = vld [vmem:[#allocation5 + $0x724] ss:$16 sps:$4 sm:$0xff]   ;;  %v1162_v19 = vrot.slane %v1157_v18, %v2783_v39 }
 0x2e5   :  { %v864_v26 = vpack.c.bf16 %v862_v22, %v860_v21  ;;  %v2596_v14 = vld [vmem:[#allocation5 + $0x844] ss:$16 sps:$4 sm:$0xff]   ;;  %v1166_v21 = vrot.slane %v1157_v18, %v2786_v41 }
 0x2e6   :  { %v865_v27 = vpack.c.bf16 %v863_v25, %v861_v23  ;;  %v2597_v15 = vld [vmem:[#allocation5 + $0x744] ss:$16 sps:$4 sm:$0xff]  }
 0x2e7   :  { %v2598_v16 = vld [vmem:[#allocation5 + $0x864] ss:$16 sps:$4 sm:$0xff]  }
 0x2e8   :  { %1361 = vmatprep.mubr.bf16.mxu0 %v865_v27  ;;  %v2599_v17 = vld [vmem:[#allocation5 + $0x764] ss:$16 sps:$4 sm:$0xff]  }
 0x2e9   :  { %1362 = vmatmul.mubr.bf16.vlgmr.msra.gmra.mrb[12].mxu0 %v864_v26 }
 0x2ea   :  { %2229 = vmatpush3.bf16.msra.mxu0 %v2585_v5 }
 0x2eb   :  { %2230 = vmatprep.subr.bf16.mxu0 %v2586_v38 }
 0x2ee   :  { %2231 = vmatpush3.bf16.msra.mxu0 %v2587_v6 }
 0x2ef   :  { %2232 = vmatprep.subr.bf16.mxu0 %v2588_v7 }
 0x2f2   :  { %2233 = vmatpush3.bf16.msra.mxu0 %v2589_v8 }
 0x2f3   :  { %2234 = vmatprep.subr.bf16.mxu0 %v2590_v9  ;;  %v1978_v9 = vld [vmem:[#allocation7 + $0xa0] ss:$0 sm:$0xff] }
 0x2f6   :  { %2235 = vmatpush3.bf16.msra.mxu0 %v2591_v10 }
 0x2f7   :  { %2236 = vmatprep.subr.bf16.mxu0 %v2592_v11 }
 0x2fa   :  { %2237 = vmatpush3.bf16.msra.mxu0 %v2593_v12 }
 0x2fb   :  { %v1105_v31 = vpop.f32.mrb[8].mxu1  ;;  %2238 = vmatprep.subr.bf16.mxu0 %v2594_v13  ;;  %v197_v13 = vld [vmem:[#allocation7 + $0x20] ss:$0 sm:$0xff] }
 0x2fc   :  { %v1106_v32 = vadd.f32 %v1105_v31, %v904_v29  ;;  %v1107_v33 = vpop.f32.mrb[9].mxu1 }
 0x2fd   :  { %v1108_v34 = vadd.f32 %v1107_v33, %v908_v30  ;;  %v1109_v35 = vpop.f32.mrb[10].mxu1 }
 0x2fe   :  { %v1114_v36 = vmul.f32 0.2, %v1106_v32  ;;  %v1110_v37 = vadd.f32 %v1109_v35, %v904_v29  ;;  %v1111_v40 = vpop.f32.mrb[11].mxu1  ;;  %2239 = vmatpush3.bf16.msra.mxu0 %v2595_v0 }
 0x2ff   :  { %v1115_v42 = vmul.f32 0.2, %v1108_v34  ;;  %v1112_v43 = vadd.f32 %v1111_v40, %v908_v30  ;;  %2240 = vmatprep.subr.bf16.mxu0 %v2596_v14 }
 0x300   :  { %v1116_v44 = vmul.f32 0.2, %v1110_v37  ;;  %v1118_v46 = vmax.f32 %v1106_v32, %v1114_v36 }
 0x301   :  { %v1117_v45 = vmul.f32 0.2, %v1112_v43  ;;  %v1119_v48 = vmax.f32 %v1108_v34, %v1115_v42 }
 0x302   :  { %v1120_v47 = vmax.f32 %v1110_v37, %v1116_v44  ;;  %2241 = vmatpush3.bf16.msra.mxu0 %v2597_v15  ;;  %v1415_v44 = vld [vmem:[#allocation7 + $0x90] ss:$8 sm:$0x3] }
 0x303   :  { %v1121_v49 = vmax.f32 %v1112_v43, %v1117_v45  ;;  %2242 = vmatprep.subr.bf16.mxu0 %v2598_v16  ;;  %v1420_v45 = vrot.slane %v1415_v44, %v2783_v39  ;;  %v281_v16 = vadd.f32 %v2797_v20, %v197_v13 }
 0x304   :  { %v1122_v50 = vpack.c.bf16 %v1120_v47, %v1118_v46  ;;  %v1424_v46 = vrot.slane %v1415_v44, %v2786_v41 }
 0x305   :  { %v1123_v51 = vpack.c.bf16 %v1121_v49, %v1119_v48  ;;  %v1981_v18 = vmul.f32 0.2, %v281_v16 }
 0x306   :  { %2243 = vmatpush3.bf16.msra.mxu0 %v2599_v17  ;;  %v284_v17 = vadd.f32 %v2799_v24, %v197_v13 }
 0x307   :  { %1619 = vmatprep.mubr.bf16.mxu1 %v1123_v51 }
 0x308   :  { %1620 = vmatmul.mubr.bf16.vlgmr.msra.gmra.mrb[12].mxu1 %v1122_v50 }
 0x309   :  { %2251 = vmatpush3.bf16.msra.mxu1 %v2569_v52 }
 0x30a   :  { %2252 = vmatprep.subr.bf16.mxu1 %v2570_v53 }
 0x30d   :  { %2253 = vmatpush3.bf16.msra.mxu1 %v2571_v54 }
 0x30e   :  { %2254 = vmatprep.subr.bf16.mxu1 %v2572_v55 }
 0x311   :  { %2255 = vmatpush3.bf16.msra.mxu1 %v2573_v56 }
 0x312   :  { %2256 = vmatprep.subr.bf16.mxu1 %v2574_v57 }
 0x315   :  { %2257 = vmatpush3.bf16.msra.mxu1 %v2575_v58 }
 0x316   :  { %2258 = vmatprep.subr.bf16.mxu1 %v2576_v59 }
 0x319   :  { %2259 = vmatpush3.bf16.msra.mxu1 %v2577_v60 }
 0x31a   :  { %2260 = vmatprep.subr.bf16.mxu1 %v2578_v61 }
 0x31d   :  { %2261 = vmatpush3.bf16.msra.mxu1 %v2579_v62 }
 0x31e   :  { %2262 = vmatprep.subr.bf16.mxu1 %v2580_v63 }
 0x321   :  { %2263 = vmatpush3.bf16.msra.mxu1 %v2581_v1 }
 0x322   :  { %2264 = vmatprep.subr.bf16.mxu1 %v2582_v2 }
 0x325   :  { %2265 = vmatpush3.bf16.msra.mxu1 %v2583_v3 }
 0x3bc   :  { %v1363_v22 = vpop.f32.mrb[12].mxu0 }
 0x3bd   :  { %v1364_v23 = vadd.f32 %v1363_v22, %v1162_v19  ;;  %v1365_v25 = vpop.f32.mrb[13].mxu0 }
 0x3be   :  { %v1366_v26 = vadd.f32 %v1365_v25, %v1166_v21  ;;  %v1367_v27 = vpop.f32.mrb[14].mxu0 }
 0x3bf   :  { %v1372_v28 = vmul.f32 0.2, %v1364_v23  ;;  %v1368_v29 = vadd.f32 %v1367_v27, %v1162_v19  ;;  %v1369_v30 = vpop.f32.mrb[15].mxu0  ;;  %v1982_v19 = vmul.f32 0.2, %v284_v17 }
 0x3c0   :  { %v1373_v31 = vmul.f32 0.2, %v1366_v26  ;;  %v1370_v32 = vadd.f32 %v1369_v30, %v1166_v21  ;;  %v1983_v21 = vmax.f32 %v281_v16, %v1981_v18 }
 0x3c1   :  { %v1374_v33 = vmul.f32 0.2, %v1368_v29  ;;  %v1376_v35 = vmax.f32 %v1364_v23, %v1372_v28  ;;  %v1984_v23 = vmax.f32 %v284_v17, %v1982_v19 }
 0x3c2   :  { %v1375_v34 = vmul.f32 0.2, %v1370_v32  ;;  %v1377_v37 = vmax.f32 %v1366_v26, %v1373_v31 }
 0x3c3   :  { %v1378_v36 = vmax.f32 %v1368_v29, %v1374_v33 }
 0x3c4   :  { %v1379_v40 = vmax.f32 %v1370_v32, %v1375_v34 }
 0x3c5   :  { %v1380_v42 = vpack.c.bf16 %v1378_v36, %v1376_v35 }
 0x3c6   :  { %v1381_v43 = vpack.c.bf16 %v1379_v40, %v1377_v37 }
 0x3c8   :  { %1969 = vmatprep.mubr.bf16.mxu1 %v1381_v43 }
 0x3c9   :  { %1970 = vmatmul.mubr.bf16.vlgmr.msra.gmra.mrb[16].mxu1 %v1380_v42 }
 0x3db   :  { %v1621_v47 = vpop.f32.mrb[12].mxu1 }
 0x3dc   :  { %v1622_v48 = vadd.f32 %v1621_v47, %v1420_v45  ;;  %v1623_v49 = vpop.f32.mrb[13].mxu1 }
 0x3dd   :  { %v1624_v50 = vadd.f32 %v1623_v49, %v1424_v46  ;;  %v1625_v51 = vpop.f32.mrb[14].mxu1 }
 0x3de   :  { %v1630_v52 = vmul.f32 0.2, %v1622_v48  ;;  %v1626_v53 = vadd.f32 %v1625_v51, %v1420_v45  ;;  %v1627_v54 = vpop.f32.mrb[15].mxu1 }
 0x3df   :  { %v1631_v55 = vmul.f32 0.2, %v1624_v50  ;;  %v1628_v56 = vadd.f32 %v1627_v54, %v1424_v46 }
 0x3e0   :  { %v1632_v57 = vmul.f32 0.2, %v1626_v53  ;;  %v1634_v59 = vmax.f32 %v1622_v48, %v1630_v52 }
 0x3e1   :  { %v1633_v58 = vmul.f32 0.2, %v1628_v56  ;;  %v1635_v61 = vmax.f32 %v1624_v50, %v1631_v55 }
 0x3e2   :  { %v1636_v60 = vmax.f32 %v1626_v53, %v1632_v57 }
 0x3e3   :  { %v1637_v62 = vmax.f32 %v1628_v56, %v1633_v58 }
 0x3e4   :  { %v1638_v63 = vpack.c.bf16 %v1636_v60, %v1634_v59 }
 0x3e5   :  { %v1639_v39 = vpack.c.bf16 %v1637_v62, %v1635_v61 }
 0x3e7   :  { %1832 = vmatprep.mubr.bf16.mxu0 %v1639_v39 }
 0x3e8   :  { %1833 = vmatmul.mubr.bf16.vlgmr.msra.gmra.mrb[16].mxu0 %v1638_v63 }
 0x49c   :  { %v2266_v41 = vpop.f32.mrb[16].mxu1 }
 0x49d   :  { %v2267_v1 = vpop.f32.mrb[17].mxu1 }
 0x49e   :  { %v2268_v2 = vadd.f32 %v2267_v1, %v2266_v41  ;;  %v2269_v3 = vpop.f32.mrb[18].mxu1 }
 0x49f   :  { %v2270_v4 = vpop.f32.mrb[19].mxu1 }
 0x4a0   :  { %v2271_v5 = vadd.f32 %v2270_v4, %v2269_v3 }
 0x4bb   :  { %v2244_v38 = vpop.f32.mrb[16].mxu0 }
 0x4bc   :  { %v2245_v6 = vpop.f32.mrb[17].mxu0 }
 0x4bd   :  { %v2246_v7 = vadd.f32 %v2245_v6, %v2244_v38  ;;  %v2247_v8 = vpop.f32.mrb[18].mxu0 }
 0x4be   :  { %v2248_v10 = vpop.f32.mrb[19].mxu0 }
 0x4bf   :  { %v1972_v11 = vadd.f32 %v2268_v2, %v2246_v7  ;;  %v2249_v12 = vadd.f32 %v2248_v10, %v2247_v8 }
 0x4c1   :  { %v1979_v0 = vadd.f32 %v1978_v9, %v1972_v11  ;;  %v1975_v14 = vadd.f32 %v2271_v5, %v2249_v12 }
 0x4c3   :  { %2600 = vtanh.f32 %v1979_v0  ;;  %v1980_v15 = vadd.f32 %v1978_v9, %v1975_v14 }
 0x4c5   :  { %2602 = vtanh.f32 %v1980_v15 }
 0x4cd   :  { %v2601_v22 = vpop.eup %2600 }
 0x4ce   :  { %v1987_v25 = vadd.f32 %v2601_v22, %v1983_v21 }
 0x4cf   :  { %v2603_v26 = vpop.eup %2602 }
 0x4d0   :  { %v1988_v27 = vadd.f32 %v2603_v26, %v1984_v23  ;;  %1989 = vst [vmem:[#allocation8] sm:$0xff] %v1987_v25 }
 0x4d2   :  { %1990 = vst [vmem:[#allocation8 + $0x8] sm:$0xff] %v1988_v27 }
 0x4d3   :  { %2681 = shalt.err (!%p2678_p0)
}
 0x4d4   :  { %s2682_s29 = scalar_lea.hbm %s2828_s3, 256 }
 0x4d5   :  { %p2683_p1 = scmp.ne.s32.totalorder %s2828_s3, %s2682_s29  ;;  %p2686_p2 = scmp.lt.u32.totalorder %s2682_s29, %s2828_s3 }
 0x4d7   :  { %p2688_p3 = pnand %p2686_p2, %p2683_p1 }
 0x4d9   :  { %2691 = shalt.err (!%p2688_p3)
}
 0x4da   :  { %s2711_s7 = smov 128   ;;  %s2712_s8 = smov 8  }
 0x4db   :  { %2002 = dma.vmem_to_hbm [thread:$0]  %s1997_s25, 256, %s2828_s3, [#allocation4], %s2711_s7, %s2711_s7, %s2712_s8  }
 0x4dc   :  { %2696 = dma.done.wait [#allocation4], 256  }
 0x4dd   :  { %2697 = vsyncadd [#allocation4], 4294967040 }
 0x4de   :  { %2006 = vsyncpa [#allocation3], 1 }
 0x4df   :  { %2007 = vsyncpa [#allocation6], 1 }
 0x4e0   :  { %2008 = vsyncpa [#allocation4], 1 }

</bundles_post_ra>
